<compile_context>
chip_gen: v7x
topology: tpu7x:2x2x1
jax: 0.10.0
libtpu: 0.0.40
codegen_flags: <defaults>
</compile_context>

<pallas_src>
import math

import jax
import jax.numpy as jnp
import numpy as np
from jax.experimental import pallas as pl
from jax.experimental.pallas import tpu as pltpu


def _round_up(v, m):
    return ((v + m - 1) // m) * m


# ------------------------------ JAX wrapper ------------------------------- #
def tgcn_forward(x, lap, W1, b1, W2, b2, Wl, bl):
    """TGCN forward.

    x: (B, S, N, F); parameters in the PyTorch layout:
      W1 (F+H, 2H), b1 (2H,), W2 (F+H, H), b2 (H,), Wl (OUT, H), bl (OUT,).
    Returns (B*N, OUT), matching the PyTorch module's output ordering.
    """
    B, S, N, F = x.shape
    OUT, H = Wl.shape
    assert W1.shape[0] == F + H and W2.shape[0] == F + H
    # Layout assumptions behind the in-kernel slices / reshape tricks:
    assert N % 2 == 0, "torch.chunk interleaving assumes an even node count"
    assert N % 8 == 0, "node-axis slices must be sublane (8) aligned"
    assert (B * H) % 128 == 0, "B*H hidden lanes must be lane (128) aligned"

    BH = B * H
    BF = B * F
    BF_pad = _round_up(BF, 128)       # lane-aligned per-timestep x block
    OUT_pad = _round_up(B * OUT, 128)  # lane-dense output slab
    SN = S * N
    f32 = jnp.float32
    bf16 = jnp.bfloat16

    eyeB = jnp.eye(B, dtype=f32)

    # ---- block-diagonal (over batch) weights; gate lanes ordered [half,b,k].
    w1x = W1[:F].astype(f32).reshape(F, 2, H)
    w1h = W1[F:].astype(f32).reshape(H, 2, H)
    w2x = W2[:F].astype(f32)
    w2h = W2[F:].astype(f32)

    wxg = jnp.einsum("bc,fhk->bfhck", eyeB, w1x).reshape(BF, 2 * BH)
    wxc = jnp.einsum("bc,fk->bfck", eyeB, w2x).reshape(BF, BH)
    wx_blk = jnp.concatenate([wxg, wxc], axis=1)                  # (BF, 3BH)
    wx_blk = jnp.pad(wx_blk, ((0, BF_pad - BF), (0, 0)))          # zero-pad K

    # Recurrence-chain weights in bf16 (MXU-native; f32 accumulation in-kernel)
    w1h_blk = jnp.einsum("bc,jhk->bjhck", eyeB, w1h).reshape(BH, 2 * BH).astype(bf16)
    w2h_blk = jnp.einsum("bc,jk->bjck", eyeB, w2h).reshape(BH, BH).astype(bf16)

    # Final nn.Linear, padded to 128 output lanes for an unmasked lane-dense store.
    wl_blk = jnp.einsum("bc,jo->bjco", eyeB, Wl.T.astype(f32)).reshape(BH, B * OUT)
    wl_blk = jnp.pad(wl_blk, ((0, 0), (0, OUT_pad - B * OUT)))
    bl_blk = jnp.tile(bl.astype(f32).reshape(1, OUT), (B, 1)).reshape(1, B * OUT)
    bl_blk = jnp.pad(bl_blk, ((0, 0), (0, OUT_pad - B * OUT)))

    bg = jnp.tile(b1.astype(f32).reshape(2, 1, H), (1, B, 1)).reshape(1, 2 * BH)
    bcb = jnp.tile(b2.astype(f32).reshape(1, H), (B, 1)).reshape(1, BH)
    bx_blk = jnp.concatenate([bg, bcb], axis=1)                   # (1, 3BH)

    # ---- x stacked over time along sublanes: row = t*N + n, lane = b*F + f.
    xs = jnp.transpose(x.astype(f32), (1, 2, 0, 3)).reshape(SN, BF)
    xs = jnp.pad(xs, ((0, 0), (0, BF_pad - BF)))                  # (SN, BF_pad)

    lap_f32 = lap.astype(f32)
    lapS = jnp.kron(jnp.eye(S, dtype=f32), lap_f32)               # (SN, SN) x-path
    lap_bf = lap_f32.astype(bf16)                                 # (N, N) recurrence

    # ----------------------------- Pallas kernel --------------------------- #
    def kernel(xs_ref, lapS_ref, lap_ref, wx_ref, bx_ref,
               w1h_ref, w2h_ref, wl_ref, bl_ref, out_ref):
        def mm(a, b):
            return jnp.dot(a, b, preferred_element_type=jnp.float32)

        # Hoisted ref loads (the loops below are fully unrolled Python loops).
        lap_r = lap_ref[...]          # bf16, on the serial chain
        w1h_r = w1h_ref[...]          # bf16
        w2h_r = w2h_ref[...]          # bf16
        wl_r = wl_ref[...]            # f32
        bl_r = bl_ref[...]            # f32

        # Hoisted x-only work: two M = S*N matmuls cover all S timesteps
        # (off the serial recurrence chain).
        ax_all = mm(lapS_ref[...], xs_ref[...])            # (SN, BF_pad)  f32
        xp_all = mm(ax_all, wx_ref[...]) + bx_ref[...]     # (SN, 3*BH)   f32

        def x_slabs(t):
            slab = xp_all[t * N:(t + 1) * N, :]            # 8-aligned sublanes
            return slab[:, :2 * BH], slab[:, 2 * BH:]      # 128-aligned lanes

        half = N // 2

        def select_ru(g_half):
            # torch.chunk interleave:
            #   out[n, b*H + k] = g_half[n//2, (n%2)*BH + b*H + k]
            # which is exactly a row-major (N/2, 2*BH) -> (N, BH) reshape.
            return g_half.reshape(N, BH)

        # Step 0: hidden state is exactly zero -> skip all h matmuls; r unused
        # because r * h == 0.
        xg0, xc0 = x_slabs(0)
        gates = jax.nn.sigmoid(xg0)                        # (N, 2BH) f32
        u = select_ru(gates[half:])                        # (N, BH)
        c = jnp.tanh(xc0)                                  # (N, BH)
        h = (1.0 - u) * c                                  # f32 carried state

        # Remaining steps: only h-dependent matmuls sit on this serial chain;
        # their MXU operands are bf16, accumulation f32, element-wise math f32.
        for t in range(1, S):
            xg, xc = x_slabs(t)
            ah = mm(lap_r, h.astype(jnp.bfloat16))                     # (N, BH)
            gates = jax.nn.sigmoid(xg + mm(ah.astype(jnp.bfloat16), w1h_r))
            r = select_ru(gates[:half])
            u = select_ru(gates[half:])
            arh = mm(lap_r, (r * h).astype(jnp.bfloat16))              # (N, BH)
            c = jnp.tanh(xc + mm(arh.astype(jnp.bfloat16), w2h_r))
            h = u * h + (1.0 - u) * c

        # Final nn.Linear(H, OUT) on the last hidden state (lane-dense store).
        out_ref[...] = mm(h, wl_r) + bl_r                  # (N, OUT_pad)

    # Advisory cost so XLA can schedule surrounding HLO around this call.
    flops = (2 * SN * SN * BF_pad + 2 * SN * BF_pad * 3 * BH
             + (S - 1) * (2 * 2 * N * N * BH
                          + 2 * N * BH * 2 * BH
                          + 2 * N * BH * BH)
             + 2 * N * BH * OUT_pad)
    transcendentals = S * (N * 2 * BH + N * BH)
    bytes_accessed = (4 * (xs.size + lapS.size + wx_blk.size + bx_blk.size
                           + wl_blk.size + bl_blk.size + N * OUT_pad)
                      + 2 * (lap_bf.size + w1h_blk.size + w2h_blk.size))

    vmem = pl.BlockSpec(memory_space=pltpu.MemorySpace.VMEM)
    out = pl.pallas_call(
        kernel,
        out_shape=jax.ShapeDtypeStruct((N, OUT_pad), jnp.float32),
        in_specs=[vmem] * 9,
        out_specs=vmem,
        cost_estimate=pl.CostEstimate(flops=int(flops),
                                      transcendentals=int(transcendentals),
                                      bytes_accessed=int(bytes_accessed)),
        compiler_params=pltpu.CompilerParams(vmem_limit_bytes=32 * 1024 * 1024),
    )(xs, lapS, lap_bf, wx_blk, bx_blk, w1h_blk, w2h_blk, wl_blk, bl_blk)

    # (N, OUT_pad) -> (N, B*OUT) -> (B*N, OUT), torch row ordering b*N + n.
    out = out[:, :B * OUT]
    return jnp.transpose(out.reshape(N, B, OUT), (1, 0, 2)).reshape(B * N, OUT)


# ------------------------- plain-JAX reference ----------------------------- #
def calculate_laplacian_with_self_loop(adj):
    a = adj + jnp.eye(adj.shape[0], dtype=adj.dtype)
    row_sum = a.sum(axis=1)
    d_inv_sqrt = jnp.power(row_sum, -0.5)
    d_inv_sqrt = jnp.where(jnp.isinf(d_inv_sqrt), 0.0, d_inv_sqrt)
    d = jnp.diag(d_inv_sqrt)
    return (a @ d).T @ d


def _graph_conv_ref(lap, inputs, hidden_flat, W, b, num_gru_units):
    B, N, F = inputs.shape
    hidden = hidden_flat.reshape(B, N, num_gru_units)
    concat = jnp.concatenate([inputs, hidden], axis=2)
    K = F + num_gru_units
    concat = jnp.transpose(concat, (1, 2, 0)).reshape(N, K * B)
    a = lap @ concat
    a = a.reshape(N, K, B)
    a = jnp.transpose(a, (2, 0, 1)).reshape(B * N, K)
    out = a @ W + b
    return out.reshape(B, N * W.shape[1])


def tgcn_reference(x, lap, W1, b1, W2, b2, Wl, bl, H):
    B, S, N, F = x.shape
    h = jnp.zeros((B, N * H), jnp.float32)
    out = None
    for i in range(S):
        xi = x[:, i]
        gates = jax.nn.sigmoid(_graph_conv_ref(lap, xi, h, W1, b1, H))
        r, u = jnp.split(gates, 2, axis=1)
        c = jnp.tanh(_graph_conv_ref(lap, xi, r * h, W2, b2, H))
        h = u * h + (1.0 - u) * c
        out = h.reshape(B, N, H)
    out = out.reshape(-1, H)
    return out @ Wl.T + bl


# ---------------------------------- main ----------------------------------- #
if __name__ == "__main__":
    # Shapes implied by the module: feature dim = 17 (weights have H+17 rows),
    # hidden dim = 64 (Linear(64, 12)), N = adj.shape[0].
    B, S, N, F, H, OUT = 2, 4, 16, 17, 64, 12

    key = jax.random.PRNGKey(0)
    ka, kx, k1, k2, k3, k4 = jax.random.split(key, 6)

    adj = (jax.random.uniform(ka, (N, N)) > 0.5).astype(jnp.float32)
    adj = jnp.maximum(adj, adj.T)
    lap = calculate_laplacian_with_self_loop(adj)

    x = jax.random.normal(kx, (B, S, N, F), dtype=jnp.float32)

    def xavier_uniform(k, shape):
        bound = math.sqrt(6.0 / (shape[0] + shape[1]))
        return jax.random.uniform(k, shape, jnp.float32, -bound, bound)

    W1 = xavier_uniform(k1, (H + F, 2 * H))
    b1 = jnp.full((2 * H,), 1.0, jnp.float32)      # bias=1.0 in graph_conv1
    W2 = xavier_uniform(k2, (H + F, H))
    b2 = jnp.zeros((H,), jnp.float32)              # bias=0.0 in graph_conv2
    lin_bound = 1.0 / math.sqrt(H)
    Wl = jax.random.uniform(k3, (OUT, H), jnp.float32, -lin_bound, lin_bound)
    bl = jax.random.uniform(k4, (OUT,), jnp.float32, -lin_bound, lin_bound)

    out = tgcn_forward(x, lap, W1, b1, W2, b2, Wl, bl)
    out = jax.block_until_ready(out)

    ref = tgcn_reference(x, lap, W1, b1, W2, b2, Wl, bl, H)
    # The recurrence-chain matmuls run with bf16 MXU operands (f32 accumulate),
    # so the output differs from the pure-f32 reference at the ~1e-3..1e-2
    # absolute level; tolerance loosened accordingly.
    np.testing.assert_allclose(np.asarray(out), np.asarray(ref),
                               rtol=3e-2, atol=3e-2)
    print("KERNEL_OK")
</pallas_src>

<mosaic_0001>
module attributes {stable_mosaic.version = 11 : i64} {
  func.func @kernel(%arg0: memref<64x128xf32, #tpu.memory_space<vmem>>, %arg1: memref<64x64xf32, #tpu.memory_space<vmem>>, %arg2: memref<16x16xbf16, #tpu.memory_space<vmem>>, %arg3: memref<128x384xf32, #tpu.memory_space<vmem>>, %arg4: memref<1x384xf32, #tpu.memory_space<vmem>>, %arg5: memref<128x256xbf16, #tpu.memory_space<vmem>>, %arg6: memref<128x128xbf16, #tpu.memory_space<vmem>>, %arg7: memref<128x128xf32, #tpu.memory_space<vmem>>, %arg8: memref<1x128xf32, #tpu.memory_space<vmem>>, %arg9: memref<16x128xf32, #tpu.memory_space<vmem>>) attributes {dimension_semantics = [], scalar_prefetch = 0 : i64, scratch_operands = 0 : i64, tpu.core_type = #tpu.core_type<tc>} {
    %c0 = arith.constant 0 : index
    %c0_0 = arith.constant 0 : index
    %0 = vector.load %arg2[%c0, %c0_0] : memref<16x16xbf16, #tpu.memory_space<vmem>>, vector<16x16xbf16>
    %c0_1 = arith.constant 0 : index
    %c0_2 = arith.constant 0 : index
    %1 = vector.load %arg5[%c0_1, %c0_2] : memref<128x256xbf16, #tpu.memory_space<vmem>>, vector<128x256xbf16>
    %c0_3 = arith.constant 0 : index
    %c0_4 = arith.constant 0 : index
    %2 = vector.load %arg6[%c0_3, %c0_4] : memref<128x128xbf16, #tpu.memory_space<vmem>>, vector<128x128xbf16>
    %c0_5 = arith.constant 0 : index
    %c0_6 = arith.constant 0 : index
    %3 = vector.load %arg7[%c0_5, %c0_6] : memref<128x128xf32, #tpu.memory_space<vmem>>, vector<128x128xf32>
    %c0_7 = arith.constant 0 : index
    %c0_8 = arith.constant 0 : index
    %4 = vector.load %arg8[%c0_7, %c0_8] : memref<1x128xf32, #tpu.memory_space<vmem>>, vector<1x128xf32>
    %c0_9 = arith.constant 0 : index
    %c0_10 = arith.constant 0 : index
    %5 = vector.load %arg1[%c0_9, %c0_10] : memref<64x64xf32, #tpu.memory_space<vmem>>, vector<64x64xf32>
    %c0_11 = arith.constant 0 : index
    %c0_12 = arith.constant 0 : index
    %6 = vector.load %arg0[%c0_11, %c0_12] : memref<64x128xf32, #tpu.memory_space<vmem>>, vector<64x128xf32>
    %cst = arith.constant dense<0.000000e+00> : vector<64x128xf32>
    %7 = tpu.matmul %5, %6, %cst {dimension_numbers = #tpu.dot_dimension_numbers<[1], [0], [0], [1], [0, 0, 1, 1], [], []>} : vector<64x64xf32>, vector<64x128xf32>, vector<64x128xf32> -> vector<64x128xf32>
    %c0_13 = arith.constant 0 : index
    %c0_14 = arith.constant 0 : index
    %8 = vector.load %arg3[%c0_13, %c0_14] : memref<128x384xf32, #tpu.memory_space<vmem>>, vector<128x384xf32>
    %cst_15 = arith.constant dense<0.000000e+00> : vector<64x384xf32>
    %9 = tpu.matmul %7, %8, %cst_15 {dimension_numbers = #tpu.dot_dimension_numbers<[1], [0], [0], [1], [0, 0, 1, 1], [], []>} : vector<64x128xf32>, vector<128x384xf32>, vector<64x384xf32> -> vector<64x384xf32>
    %c0_16 = arith.constant 0 : index
    %c0_17 = arith.constant 0 : index
    %10 = vector.load %arg4[%c0_16, %c0_17] : memref<1x384xf32, #tpu.memory_space<vmem>>, vector<1x384xf32>
    %11 = vector.broadcast %10 : vector<1x384xf32> to vector<64x384xf32>
    %12 = arith.addf %9, %11 : vector<64x384xf32>
    %13 = vector.extract_strided_slice %12 {offsets = [0, 0], sizes = [16, 384], strides = [1, 1]} : vector<64x384xf32> to vector<16x384xf32>
    %14 = vector.extract_strided_slice %13 {offsets = [0, 0], sizes = [16, 256], strides = [1, 1]} : vector<16x384xf32> to vector<16x256xf32>
    %15 = vector.extract_strided_slice %13 {offsets = [0, 256], sizes = [16, 128], strides = [1, 1]} : vector<16x384xf32> to vector<16x128xf32>
    %16 = arith.negf %14 : vector<16x256xf32>
    %17 = math.exp %16 : vector<16x256xf32>
    %cst_18 = arith.constant 1.000000e+00 : f32
    %18 = vector.broadcast %cst_18 : f32 to vector<16x256xf32>
    %19 = arith.addf %18, %17 : vector<16x256xf32>
    %20 = arith.divf %18, %19 : vector<16x256xf32>
    %21 = vector.extract_strided_slice %20 {offsets = [8, 0], sizes = [8, 256], strides = [1, 1]} : vector<16x256xf32> to vector<8x256xf32>
    %22 = vector.shape_cast %21 : vector<8x256xf32> to vector<16x128xf32>
    %23 = math.tanh %15 : vector<16x128xf32>
    %cst_19 = arith.constant 1.000000e+00 : f32
    %24 = vector.broadcast %cst_19 : f32 to vector<16x128xf32>
    %25 = arith.subf %24, %22 : vector<16x128xf32>
    %26 = arith.mulf %25, %23 : vector<16x128xf32>
    %27 = vector.extract_strided_slice %12 {offsets = [16, 0], sizes = [16, 384], strides = [1, 1]} : vector<64x384xf32> to vector<16x384xf32>
    %28 = vector.extract_strided_slice %27 {offsets = [0, 0], sizes = [16, 256], strides = [1, 1]} : vector<16x384xf32> to vector<16x256xf32>
    %29 = vector.extract_strided_slice %27 {offsets = [0, 256], sizes = [16, 128], strides = [1, 1]} : vector<16x384xf32> to vector<16x128xf32>
    %30 = arith.truncf %26 : vector<16x128xf32> to vector<16x128xbf16>
    %cst_20 = arith.constant dense<0.000000e+00> : vector<16x128xf32>
    %31 = tpu.matmul %0, %30, %cst_20 {dimension_numbers = #tpu.dot_dimension_numbers<[1], [0], [0], [1], [0, 0, 1, 1], [], []>} : vector<16x16xbf16>, vector<16x128xbf16>, vector<16x128xf32> -> vector<16x128xf32>
    %32 = arith.truncf %31 : vector<16x128xf32> to vector<16x128xbf16>
    %cst_21 = arith.constant dense<0.000000e+00> : vector<16x256xf32>
    %33 = tpu.matmul %32, %1, %cst_21 {dimension_numbers = #tpu.dot_dimension_numbers<[1], [0], [0], [1], [0, 0, 1, 1], [], []>} : vector<16x128xbf16>, vector<128x256xbf16>, vector<16x256xf32> -> vector<16x256xf32>
    %34 = arith.addf %28, %33 : vector<16x256xf32>
    %35 = arith.negf %34 : vector<16x256xf32>
    %36 = math.exp %35 : vector<16x256xf32>
    %cst_22 = arith.constant 1.000000e+00 : f32
    %37 = vector.broadcast %cst_22 : f32 to vector<16x256xf32>
    %38 = arith.addf %37, %36 : vector<16x256xf32>
    %39 = arith.divf %37, %38 : vector<16x256xf32>
    %40 = vector.extract_strided_slice %39 {offsets = [0, 0], sizes = [8, 256], strides = [1, 1]} : vector<16x256xf32> to vector<8x256xf32>
    %41 = vector.shape_cast %40 : vector<8x256xf32> to vector<16x128xf32>
    %42 = vector.extract_strided_slice %39 {offsets = [8, 0], sizes = [8, 256], strides = [1, 1]} : vector<16x256xf32> to vector<8x256xf32>
    %43 = vector.shape_cast %42 : vector<8x256xf32> to vector<16x128xf32>
    %44 = arith.mulf %41, %26 : vector<16x128xf32>
    %45 = arith.truncf %44 : vector<16x128xf32> to vector<16x128xbf16>
    %cst_23 = arith.constant dense<0.000000e+00> : vector<16x128xf32>
    %46 = tpu.matmul %0, %45, %cst_23 {dimension_numbers = #tpu.dot_dimension_numbers<[1], [0], [0], [1], [0, 0, 1, 1], [], []>} : vector<16x16xbf16>, vector<16x128xbf16>, vector<16x128xf32> -> vector<16x128xf32>
    %47 = arith.truncf %46 : vector<16x128xf32> to vector<16x128xbf16>
    %cst_24 = arith.constant dense<0.000000e+00> : vector<16x128xf32>
    %48 = tpu.matmul %47, %2, %cst_24 {dimension_numbers = #tpu.dot_dimension_numbers<[1], [0], [0], [1], [0, 0, 1, 1], [], []>} : vector<16x128xbf16>, vector<128x128xbf16>, vector<16x128xf32> -> vector<16x128xf32>
    %49 = arith.addf %29, %48 : vector<16x128xf32>
    %50 = math.tanh %49 : vector<16x128xf32>
    %51 = arith.mulf %43, %26 : vector<16x128xf32>
    %cst_25 = arith.constant 1.000000e+00 : f32
    %52 = vector.broadcast %cst_25 : f32 to vector<16x128xf32>
    %53 = arith.subf %52, %43 : vector<16x128xf32>
    %54 = arith.mulf %53, %50 : vector<16x128xf32>
    %55 = arith.addf %51, %54 : vector<16x128xf32>
    %56 = vector.extract_strided_slice %12 {offsets = [32, 0], sizes = [16, 384], strides = [1, 1]} : vector<64x384xf32> to vector<16x384xf32>
    %57 = vector.extract_strided_slice %56 {offsets = [0, 0], sizes = [16, 256], strides = [1, 1]} : vector<16x384xf32> to vector<16x256xf32>
    %58 = vector.extract_strided_slice %56 {offsets = [0, 256], sizes = [16, 128], strides = [1, 1]} : vector<16x384xf32> to vector<16x128xf32>
    %59 = arith.truncf %55 : vector<16x128xf32> to vector<16x128xbf16>
    %cst_26 = arith.constant dense<0.000000e+00> : vector<16x128xf32>
    %60 = tpu.matmul %0, %59, %cst_26 {dimension_numbers = #tpu.dot_dimension_numbers<[1], [0], [0], [1], [0, 0, 1, 1], [], []>} : vector<16x16xbf16>, vector<16x128xbf16>, vector<16x128xf32> -> vector<16x128xf32>
    %61 = arith.truncf %60 : vector<16x128xf32> to vector<16x128xbf16>
    %cst_27 = arith.constant dense<0.000000e+00> : vector<16x256xf32>
    %62 = tpu.matmul %61, %1, %cst_27 {dimension_numbers = #tpu.dot_dimension_numbers<[1], [0], [0], [1], [0, 0, 1, 1], [], []>} : vector<16x128xbf16>, vector<128x256xbf16>, vector<16x256xf32> -> vector<16x256xf32>
    %63 = arith.addf %57, %62 : vector<16x256xf32>
    %64 = arith.negf %63 : vector<16x256xf32>
    %65 = math.exp %64 : vector<16x256xf32>
    %cst_28 = arith.constant 1.000000e+00 : f32
    %66 = vector.broadcast %cst_28 : f32 to vector<16x256xf32>
    %67 = arith.addf %66, %65 : vector<16x256xf32>
    %68 = arith.divf %66, %67 : vector<16x256xf32>
    %69 = vector.extract_strided_slice %68 {offsets = [0, 0], sizes = [8, 256], strides = [1, 1]} : vector<16x256xf32> to vector<8x256xf32>
    %70 = vector.shape_cast %69 : vector<8x256xf32> to vector<16x128xf32>
    %71 = vector.extract_strided_slice %68 {offsets = [8, 0], sizes = [8, 256], strides = [1, 1]} : vector<16x256xf32> to vector<8x256xf32>
    %72 = vector.shape_cast %71 : vector<8x256xf32> to vector<16x128xf32>
    %73 = arith.mulf %70, %55 : vector<16x128xf32>
    %74 = arith.truncf %73 : vector<16x128xf32> to vector<16x128xbf16>
    %cst_29 = arith.constant dense<0.000000e+00> : vector<16x128xf32>
    %75 = tpu.matmul %0, %74, %cst_29 {dimension_numbers = #tpu.dot_dimension_numbers<[1], [0], [0], [1], [0, 0, 1, 1], [], []>} : vector<16x16xbf16>, vector<16x128xbf16>, vector<16x128xf32> -> vector<16x128xf32>
    %76 = arith.truncf %75 : vector<16x128xf32> to vector<16x128xbf16>
    %cst_30 = arith.constant dense<0.000000e+00> : vector<16x128xf32>
    %77 = tpu.matmul %76, %2, %cst_30 {dimension_numbers = #tpu.dot_dimension_numbers<[1], [0], [0], [1], [0, 0, 1, 1], [], []>} : vector<16x128xbf16>, vector<128x128xbf16>, vector<16x128xf32> -> vector<16x128xf32>
    %78 = arith.addf %58, %77 : vector<16x128xf32>
    %79 = math.tanh %78 : vector<16x128xf32>
    %80 = arith.mulf %72, %55 : vector<16x128xf32>
    %cst_31 = arith.constant 1.000000e+00 : f32
    %81 = vector.broadcast %cst_31 : f32 to vector<16x128xf32>
    %82 = arith.subf %81, %72 : vector<16x128xf32>
    %83 = arith.mulf %82, %79 : vector<16x128xf32>
    %84 = arith.addf %80, %83 : vector<16x128xf32>
    %85 = vector.extract_strided_slice %12 {offsets = [48, 0], sizes = [16, 384], strides = [1, 1]} : vector<64x384xf32> to vector<16x384xf32>
    %86 = vector.extract_strided_slice %85 {offsets = [0, 0], sizes = [16, 256], strides = [1, 1]} : vector<16x384xf32> to vector<16x256xf32>
    %87 = vector.extract_strided_slice %85 {offsets = [0, 256], sizes = [16, 128], strides = [1, 1]} : vector<16x384xf32> to vector<16x128xf32>
    %88 = arith.truncf %84 : vector<16x128xf32> to vector<16x128xbf16>
    %cst_32 = arith.constant dense<0.000000e+00> : vector<16x128xf32>
    %89 = tpu.matmul %0, %88, %cst_32 {dimension_numbers = #tpu.dot_dimension_numbers<[1], [0], [0], [1], [0, 0, 1, 1], [], []>} : vector<16x16xbf16>, vector<16x128xbf16>, vector<16x128xf32> -> vector<16x128xf32>
    %90 = arith.truncf %89 : vector<16x128xf32> to vector<16x128xbf16>
    %cst_33 = arith.constant dense<0.000000e+00> : vector<16x256xf32>
    %91 = tpu.matmul %90, %1, %cst_33 {dimension_numbers = #tpu.dot_dimension_numbers<[1], [0], [0], [1], [0, 0, 1, 1], [], []>} : vector<16x128xbf16>, vector<128x256xbf16>, vector<16x256xf32> -> vector<16x256xf32>
    %92 = arith.addf %86, %91 : vector<16x256xf32>
    %93 = arith.negf %92 : vector<16x256xf32>
    %94 = math.exp %93 : vector<16x256xf32>
    %cst_34 = arith.constant 1.000000e+00 : f32
    %95 = vector.broadcast %cst_34 : f32 to vector<16x256xf32>
    %96 = arith.addf %95, %94 : vector<16x256xf32>
    %97 = arith.divf %95, %96 : vector<16x256xf32>
    %98 = vector.extract_strided_slice %97 {offsets = [0, 0], sizes = [8, 256], strides = [1, 1]} : vector<16x256xf32> to vector<8x256xf32>
    %99 = vector.shape_cast %98 : vector<8x256xf32> to vector<16x128xf32>
    %100 = vector.extract_strided_slice %97 {offsets = [8, 0], sizes = [8, 256], strides = [1, 1]} : vector<16x256xf32> to vector<8x256xf32>
    %101 = vector.shape_cast %100 : vector<8x256xf32> to vector<16x128xf32>
    %102 = arith.mulf %99, %84 : vector<16x128xf32>
    %103 = arith.truncf %102 : vector<16x128xf32> to vector<16x128xbf16>
    %cst_35 = arith.constant dense<0.000000e+00> : vector<16x128xf32>
    %104 = tpu.matmul %0, %103, %cst_35 {dimension_numbers = #tpu.dot_dimension_numbers<[1], [0], [0], [1], [0, 0, 1, 1], [], []>} : vector<16x16xbf16>, vector<16x128xbf16>, vector<16x128xf32> -> vector<16x128xf32>
    %105 = arith.truncf %104 : vector<16x128xf32> to vector<16x128xbf16>
    %cst_36 = arith.constant dense<0.000000e+00> : vector<16x128xf32>
    %106 = tpu.matmul %105, %2, %cst_36 {dimension_numbers = #tpu.dot_dimension_numbers<[1], [0], [0], [1], [0, 0, 1, 1], [], []>} : vector<16x128xbf16>, vector<128x128xbf16>, vector<16x128xf32> -> vector<16x128xf32>
    %107 = arith.addf %87, %106 : vector<16x128xf32>
    %108 = math.tanh %107 : vector<16x128xf32>
    %109 = arith.mulf %101, %84 : vector<16x128xf32>
    %cst_37 = arith.constant 1.000000e+00 : f32
    %110 = vector.broadcast %cst_37 : f32 to vector<16x128xf32>
    %111 = arith.subf %110, %101 : vector<16x128xf32>
    %112 = arith.mulf %111, %108 : vector<16x128xf32>
    %113 = arith.addf %109, %112 : vector<16x128xf32>
    %cst_38 = arith.constant dense<0.000000e+00> : vector<16x128xf32>
    %114 = tpu.matmul %113, %3, %cst_38 {dimension_numbers = #tpu.dot_dimension_numbers<[1], [0], [0], [1], [0, 0, 1, 1], [], []>} : vector<16x128xf32>, vector<128x128xf32>, vector<16x128xf32> -> vector<16x128xf32>
    %115 = vector.broadcast %4 : vector<1x128xf32> to vector<16x128xf32>
    %116 = arith.addf %114, %115 : vector<16x128xf32>
    %c0_39 = arith.constant 0 : index
    %c0_40 = arith.constant 0 : index
    %117 = vector.load %arg9[%c0_39, %c0_40] : memref<16x128xf32, #tpu.memory_space<vmem>>, vector<16x128xf32>
    tpu.vector_store %arg9[%c0_39, %c0_40], %116 {strides = array<i32>} : memref<16x128xf32, #tpu.memory_space<vmem>>, vector<16x128xf32>,
    return
  }
}

</mosaic_0001>

<bundles_post_ra>
// kernel: tpu_custom_call.1
= control target key start
LH: loop header
LB: loop body
LE: loop exit
PB: predicated region body
PF: predicated region fallthrough
CT: control target
= control target key end

     0   :  { %14 = vsyncpa [#allocation3], 0  ;;  %s2949_s0 = inlined_call_operand.hbm [shape: f32[64,128], index: 0, kind: input, shape index: {}]   ;;  %s2950_s1 = inlined_call_operand.hbm [shape: f32[64,64], index: 1, kind: input, shape index: {}]   ;;  %s2951_s2 = inlined_call_operand.hbm [shape: bf16[16,16], index: 2, kind: input, shape index: {}]   ;;  %s2952_s3 = inlined_call_operand.hbm [shape: f32[128,384], index: 3, kind: input, shape index: {}]   ;;  %s2953_s4 = inlined_call_operand.vmem [shape: f32[1,384], index: 4, kind: input, shape index: {}]   ;;  %s2954_s5 = inlined_call_operand.hbm [shape: bf16[128,256], index: 5, kind: input, shape index: {}]   ;;  %s2955_s6 = inlined_call_operand.hbm [shape: bf16[128,128], index: 6, kind: input, shape index: {}]   ;;  %s2956_s7 = inlined_call_operand.hbm [shape: f32[128,128], index: 7, kind: input, shape index: {}]   ;;  %s2957_s8 = inlined_call_operand.vmem [shape: f32[1,128], index: 8, kind: input, shape index: {}]   ;;  %s2958_s9 = inlined_call_operand.hbm [shape: f32[16,128], index: 9, kind: output, shape index: {}]  }
   0x1   :  { %15 = vsyncpa [#allocation6], 0 }
   0x2   :  { %16 = vsyncpa [#allocation9], 0 }
   0x3   :  { %17 = vsyncpa [#allocation12], 0 }
   0x4   :  { %18 = vsyncpa [#allocation4], 0  ;;  %s2416_s30 = smov [#allocation5]   ;;  %s2417_s11 = smov [#allocation8]  }
   0x5   :  { %s36_s10 = sshll.u32 %s2416_s30, 4  ;;  %s60_s12 = sshll.u32 %s2417_s11, 4  ;;  %s37_s10 = int_to_ptr.vmem [resolvable:$true] %s36_s10  ;;  %s2484_s12 = int_to_ptr.vmem [resolvable:$true] %s60_s12 }
   0x6   :  { %s2230_s15 = scalar_lea.hbm %s2950_s1, 1024 }
   0x7   :  { %p2231_p0 = scmp.ne.s32.totalorder %s2950_s1, %s2230_s15  ;;  %p2234_p1 = scmp.lt.u32.totalorder %s2230_s15, %s2950_s1 }
   0x9   :  { %p2236_p2 = pnand %p2234_p1, %p2231_p0 }
   0xb   :  { %2239 = shalt.err (!%p2236_p2)
}
   0xc   :  { %s2240_s20 = scalar_lea.vmem %s37_s10, 1024  ;;  %p2245_p4 = scmp.lt.s32.totalorder %s37_s10, %s37_s10 }
   0xd   :  { %p2241_p3 = scmp.ne.s32.totalorder %s37_s10, %s2240_s20  ;;  %p2246_p5 = scmp.lt.s32.totalorder %s2240_s20, %s2240_s20 }
   0xf   :  { %p2247_p6 = por %p2246_p5, %p2245_p4 }
  0x11   :  { %p2248_p7 = pnand %p2247_p6, %p2241_p3 }
  0x13   :  { %2251 = shalt.err (!%p2248_p7)
}
  0x14   :  { %s2418_s21 = smov 128   ;;  %s2419_s22 = smov 8  }
  0x15   :  { %42 = dma.hbm_to_vmem [thread:$0]  %s2950_s1, 1024, %s37_s10, [#allocation6], %s2418_s21, %s2418_s21, %s2419_s22  }
  0x16   :  { %s2252_s27 = scalar_lea.hbm %s2952_s3, 6144 }
  0x17   :  { %p2253_p8 = scmp.ne.s32.totalorder %s2952_s3, %s2252_s27  ;;  %p2256_p9 = scmp.lt.u32.totalorder %s2252_s27, %s2952_s3 }
  0x19   :  { %p2258_p10 = pnand %p2256_p9, %p2253_p8 }
  0x1b   :  { %2261 = shalt.err (!%p2258_p10)
}
  0x1c   :  { %s2262_s13 = scalar_lea.vmem %s2484_s12, 6144  ;;  %p2267_p12 = scmp.lt.s32.totalorder %s2484_s12, %s2484_s12 }
  0x1d   :  { %p2263_p11 = scmp.ne.s32.totalorder %s2484_s12, %s2262_s13  ;;  %p2268_p13 = scmp.lt.s32.totalorder %s2262_s13, %s2262_s13 }
  0x1f   :  { %p2269_p0 = por %p2268_p13, %p2267_p12 }
  0x21   :  { %p2270_p1 = pnand %p2269_p0, %p2263_p11 }
  0x23   :  { %2273 = shalt.err (!%p2270_p1)
}
  0x24   :  { %s2420_s1 = smov 384   ;;  %s2421_s10 = smov 24  }
  0x25   :  { %66 = dma.hbm_to_vmem [thread:$0]  %s2952_s3, 6144, %s2484_s12, [#allocation9], %s2420_s1, %s2420_s1, %s2421_s10  }
  0x26   :  { %s2422_s16 = smov [#allocation11]   ;;  %s2423_s18 = smov [#allocation2]  }
  0x27   :  { %s86_s17 = sshll.u32 %s2422_s16, 4  ;;  %s24_s19 = sshll.u32 %s2423_s18, 4  ;;  %s87_s17 = int_to_ptr.vmem [resolvable:$true] %s86_s17  ;;  %s2518_s19 = int_to_ptr.vmem [resolvable:$true] %s24_s19 }
  0x28   :  { %s2274_s24 = scalar_lea.hbm %s2955_s6, 1024 }
  0x29   :  { %p2275_p2 = scmp.ne.s32.totalorder %s2955_s6, %s2274_s24  ;;  %p2278_p3 = scmp.lt.u32.totalorder %s2274_s24, %s2955_s6 }
  0x2b   :  { %p2280_p4 = pnand %p2278_p3, %p2275_p2 }
  0x2d   :  { %2283 = shalt.err (!%p2280_p4)
}
  0x2e   :  { %s2284_s3 = scalar_lea.vmem %s87_s17, 1024  ;;  %p2289_p6 = scmp.lt.s32.totalorder %s87_s17, %s87_s17 }
  0x2f   :  { %p2285_p5 = scmp.ne.s32.totalorder %s87_s17, %s2284_s3  ;;  %p2290_p7 = scmp.lt.s32.totalorder %s2284_s3, %s2284_s3 }
  0x31   :  { %p2291_p8 = por %p2290_p7, %p2289_p6 }
  0x33   :  { %p2292_p9 = pnand %p2291_p8, %p2285_p5 }
  0x35   :  { %2295 = shalt.err (!%p2292_p9)
}
  0x36   :  { %s2424_s12 = smov 64   ;;  %s2425_s29 = smov 4  }
  0x37   :  { %92 = dma.hbm_to_vmem [thread:$0]  %s2955_s6, 1024, %s87_s17, [#allocation12], %s2424_s12, %s2424_s12, %s2425_s29  }
  0x38   :  { %s2296_s10 = scalar_lea.hbm %s2949_s0, 1024 }
  0x39   :  { %p2297_p10 = scmp.ne.s32.totalorder %s2949_s0, %s2296_s10  ;;  %p2300_p11 = scmp.lt.u32.totalorder %s2296_s10, %s2949_s0 }
  0x3b   :  { %p2302_p12 = pnand %p2300_p11, %p2297_p10 }
  0x3d   :  { %2305 = shalt.err (!%p2302_p12)
}
  0x3e   :  { %s2306_s20 = scalar_lea.vmem %s2518_s19, 1024  ;;  %p2311_p0 = scmp.lt.s32.totalorder %s2518_s19, %s2518_s19 }
  0x3f   :  { %p2307_p13 = scmp.ne.s32.totalorder %s2518_s19, %s2306_s20  ;;  %p2312_p1 = scmp.lt.s32.totalorder %s2306_s20, %s2306_s20 }
  0x41   :  { %p2313_p2 = por %p2312_p1, %p2311_p0 }
  0x43   :  { %p2314_p3 = pnand %p2313_p2, %p2307_p13 }
  0x45   :  { %2317 = shalt.err (!%p2314_p3)
}
  0x46   :  { %30 = dma.hbm_to_vmem [thread:$0]  %s2949_s0, 1024, %s2518_s19, [#allocation3], %s2418_s21, %s2418_s21, %s2419_s22  }
  0x47   :  { %s2426_s23 = smov [#allocation7]   ;;  %s2427_s25 = smov [#allocation10]  }
  0x48   :  { %s48_s24 = sshll.u32 %s2426_s23, 4  ;;  %s74_s26 = sshll.u32 %s2427_s25, 4  ;;  %s49_s24 = int_to_ptr.vmem [resolvable:$true] %s48_s24  ;;  %s2555_s26 = int_to_ptr.vmem [resolvable:$true] %s74_s26 }
  0x49   :  { %s2318_s3 = scalar_lea.hbm %s2951_s2, 128 }
  0x4a   :  { %p2319_p4 = scmp.ne.s32.totalorder %s2951_s2, %s2318_s3  ;;  %p2322_p5 = scmp.lt.u32.totalorder %s2318_s3, %s2951_s2 }
  0x4c   :  { %p2324_p6 = pnand %p2322_p5, %p2319_p4 }
  0x4e   :  { %2327 = shalt.err (!%p2324_p6)
}
  0x4f   :  { %s2328_s0 = scalar_lea.vmem %s49_s24, 128  ;;  %p2333_p8 = scmp.lt.s32.totalorder %s49_s24, %s49_s24 }
  0x50   :  { %p2329_p7 = scmp.ne.s32.totalorder %s49_s24, %s2328_s0  ;;  %p2334_p9 = scmp.lt.s32.totalorder %s2328_s0, %s2328_s0 }
  0x52   :  { %p2335_p10 = por %p2334_p9, %p2333_p8 }
  0x54   :  { %p2336_p11 = pnand %p2335_p10, %p2329_p7 }
  0x56   :  { %2339 = shalt.err (!%p2336_p11)
}
  0x57   :  { %54 = dma.hbm_to_vmem [thread:$0]  %s2951_s2, 128, %s49_s24, [#allocation6], %s2424_s12, %s2424_s12, %s2425_s29  }
  0x58   :  { %s2340_s16 = scalar_lea.hbm %s2954_s5, 2048 }
  0x59   :  { %p2341_p12 = scmp.ne.s32.totalorder %s2954_s5, %s2340_s16  ;;  %p2344_p13 = scmp.lt.u32.totalorder %s2340_s16, %s2954_s5 }
  0x5b   :  { %p2346_p0 = pnand %p2344_p13, %p2341_p12 }
  0x5d   :  { %2349 = shalt.err (!%p2346_p0)
}
  0x5e   :  { %s2350_s23 = scalar_lea.vmem %s2555_s26, 2048  ;;  %p2355_p2 = scmp.lt.s32.totalorder %s2555_s26, %s2555_s26 }
  0x5f   :  { %p2351_p1 = scmp.ne.s32.totalorder %s2555_s26, %s2350_s23  ;;  %p2356_p3 = scmp.lt.s32.totalorder %s2350_s23, %s2350_s23 }
  0x61   :  { %p2357_p4 = por %p2356_p3, %p2355_p2 }
  0x63   :  { %p2358_p5 = pnand %p2357_p4, %p2351_p1 }
  0x65   :  { %2361 = shalt.err (!%p2358_p5)
}
  0x66   :  { %80 = dma.hbm_to_vmem [thread:$0]  %s2954_s5, 2048, %s2555_s26, [#allocation9], %s2418_s21, %s2418_s21, %s2419_s22  }
  0x67   :  { %s2428_s29 = smov [#allocation13]   ;;  %s2362_s28 = scalar_lea.hbm %s2956_s7, 2048 }
  0x68   :  { %s98_s24 = sshll.u32 %s2428_s29, 4  ;;  %p2363_p6 = scmp.ne.s32.totalorder %s2956_s7, %s2362_s28  ;;  %s99_s24 = int_to_ptr.vmem [resolvable:$true] %s98_s24 }
  0x69   :  { %p2366_p7 = scmp.lt.u32.totalorder %s2362_s28, %s2956_s7 }
  0x6b   :  { %p2368_p8 = pnand %p2366_p7, %p2363_p6 }
  0x6d   :  { %2371 = shalt.err (!%p2368_p8)
}
  0x6e   :  { %s2372_s1 = scalar_lea.vmem %s99_s24, 2048  ;;  %p2377_p10 = scmp.lt.s32.totalorder %s99_s24, %s99_s24 }
  0x6f   :  { %p2373_p9 = scmp.ne.s32.totalorder %s99_s24, %s2372_s1  ;;  %p2378_p11 = scmp.lt.s32.totalorder %s2372_s1, %s2372_s1 }
  0x71   :  { %p2379_p12 = por %p2378_p11, %p2377_p10 }
  0x73   :  { %p2380_p13 = pnand %p2379_p12, %p2373_p9 }
  0x75   :  { %2383 = shalt.err (!%p2380_p13)
}
  0x76   :  { %104 = dma.hbm_to_vmem [thread:$0]  %s2956_s7, 2048, %s99_s24, [#allocation12], %s2418_s21, %s2418_s21, %s2419_s22  }
  0x77   :  { %2406 = dma.done.wait [#allocation3], 1024  }
  0x78   :  { %2407 = vsyncadd [#allocation3], 4294966272 }
  0x79   :  { %2408 = dma.done.wait [#allocation6], 1152  }
  0x7a   :  { %2409 = vsyncadd [#allocation6], 4294966144 }
  0x7b   :  { %2410 = dma.done.wait [#allocation9], 8192  }
  0x7c   :  { %2411 = vsyncadd [#allocation9], 4294959104 }
  0x7d   :  { %2412 = dma.done.wait [#allocation12], 3072  }
  0x7e   :  { %2413 = vsyncadd [#allocation12], 4294964224  ;;  %v188_v0 = vld [vmem:[#allocation2] sm:$0xff]  ;;  %v189_v1 = vld [vmem:[#allocation2 + $0x8] sm:$0xff]  ;;  %vm196_vm0 = vcmask 523264   ;;  %vm2430_vm1 = vmmov 0  }
  0x7f   :  { %v190_v2 = vld [vmem:[#allocation2 + $0x10] sm:$0xff]  ;;  %v1995_v3 = vpack.c.bf16 %v189_v1, %v188_v0  ;;  %v191_v4 = vld [vmem:[#allocation2 + $0x18] sm:$0xff]  ;;  %v192_v6 = vld [vmem:[#allocation2 + $0x20] sm:$0xff]  ;;  %vm651_vm2 = vcmask 130048   ;;  %s2433_s10 = smov [#allocation14]  }
  0x80   :  { %v1999_v5 = vpack.c.bf16 %v191_v4, %v190_v2  ;;  %v193_v7 = vld [vmem:[#allocation2 + $0x28] sm:$0xff]  ;;  %v180_v8 = vld [vmem:[#allocation5] sm:$0xff]  ;;  %v327_v9 = vld [vmem:[#allocation8 + $0x8] sm:$0xff]  ;;  %s1626_s14 = sshll.u32 %s2433_s10, 4  ;;  %s1627_s14 = int_to_ptr.vmem [resolvable:$true] %s1626_s14 }
  0x81   :  { %1996 = vmatprep.subr.bf16.mxu0 %v1995_v3  ;;  %1808 = vmatprep.mubr.msk.f32.mxu0 %vm196_vm0, %v180_v8  ;;  %v330_v10 = vld [vmem:[#allocation8 + $0x20] sm:$0xff]  ;;  %v329_v13 = vld [vmem:[#allocation8 + $0x18] sm:$0xff]  ;;  %v2003_v14 = vpack.c.bf16 %v193_v7, %v192_v6  ;;  %v194_v15 = vld [vmem:[#allocation2 + $0x30] sm:$0xff]  ;;  %s2384_s15 = scalar_lea.vmem %s1627_s14, 256  ;;  %p2389_p1 = scmp.lt.s32.totalorder %s1627_s14, %s1627_s14 }
  0x82   :  { %1998 = vmatpush3.bf16.msra.mxu0 %v1995_v3  ;;  %v2011_v11 = vpack.c.bf16 %v330_v10, %v327_v9  ;;  %v326_v12 = vld [vmem:[#allocation8] sm:$0xff]  ;;  %v333_v17 = vld [vmem:[#allocation8 + $0x38] sm:$0xff]  ;;  %v336_v18 = vld [vmem:[#allocation8 + $0x50] sm:$0xff]  ;;  %p2385_p0 = scmp.ne.s32.totalorder %s1627_s14, %s2384_s15  ;;  %p2390_p2 = scmp.lt.s32.totalorder %s2384_s15, %s2384_s15 }
  0x83   :  { %2000 = vmatprep.subr.bf16.mxu0 %v1999_v5  ;;  %v2013_v16 = vpack.c.bf16 %v329_v13, %v326_v12  ;;  %v195_v19 = vld [vmem:[#allocation2 + $0x38] sm:$0xff]  ;;  %v2015_v20 = vpack.c.bf16 %v336_v18, %v333_v17  ;;  %v335_v22 = vld [vmem:[#allocation8 + $0x48] sm:$0xff]  ;;  %v342_v25 = vld [vmem:[#allocation8 + $0x80] sm:$0xff] }
  0x84   :  { %2012 = vmatprep.subr.bf16.mxu1 %v2011_v11  ;;  %v332_v21 = vld [vmem:[#allocation8 + $0x30] sm:$0xff]  ;;  %v339_v24 = vld [vmem:[#allocation8 + $0x68] sm:$0xff]  ;;  %v338_v27 = vld [vmem:[#allocation8 + $0x60] sm:$0xff]  ;;  %v2007_v29 = vpack.c.bf16 %v195_v19, %v194_v15  ;;  %p2391_p3 = por %p2390_p2, %p2389_p1 }
  0x85   :  { %2014 = vmatpush1.bf16.msra.mxu1 %v2013_v16  ;;  %v2017_v23 = vpack.c.bf16 %v335_v22, %v332_v21  ;;  %v2019_v26 = vpack.c.bf16 %v342_v25, %v339_v24  ;;  %v341_v28 = vld [vmem:[#allocation8 + $0x78] sm:$0xff]  ;;  %v348_v31 = vld [vmem:[#allocation8 + $0xb0] sm:$0xff]  ;;  %v331_v33 = vld [vmem:[#allocation8 + $0x28] sm:$0xff] }
  0x86   :  { %2002 = vmatpush3.bf16.msra.mxu0 %v1999_v5  ;;  %2016 = vmatprep.subr.bf16.mxu1 %v2015_v20  ;;  %v345_v30 = vld [vmem:[#allocation8 + $0x98] sm:$0xff]  ;;  %v328_v32 = vld [vmem:[#allocation8 + $0x10] sm:$0xff]  ;;  %v2021_v34 = vpack.c.bf16 %v341_v28, %v338_v27  ;;  %v347_v37 = vld [vmem:[#allocation8 + $0xa8] sm:$0xff]  ;;  %v2429_v28 = vmov 0.0   ;;  %p2392_p4 = pnand %p2391_p3, %p2385_p0 }
  0x87   :  { %2004 = vmatprep.subr.bf16.mxu0 %v2003_v14  ;;  %v2023_v35 = vpack.c.bf16 %v348_v31, %v345_v30  ;;  %v344_v36 = vld [vmem:[#allocation8 + $0x90] sm:$0xff]  ;;  %v2043_v38 = vpack.c.bf16 %v331_v33, %v328_v32  ;;  %v351_v39 = vld [vmem:[#allocation8 + $0xc8] sm:$0xff]  ;;  %v354_v40 = vld [vmem:[#allocation8 + $0xe0] sm:$0xff]  ;;  %455 = vmatprep.mubr.f32.mxu1 %v2429_v28 }
  0x88   :  { %v334_v41 = vld [vmem:[#allocation8 + $0x40] sm:$0xff]  ;;  %v337_v42 = vld [vmem:[#allocation8 + $0x58] sm:$0xff]  ;;  %v2025_v43 = vpack.c.bf16 %v347_v37, %v344_v36  ;;  %v2027_v45 = vpack.c.bf16 %v354_v40, %v351_v39  ;;  %v360_v50 = vld [vmem:[#allocation8 + $0x110] sm:$0xff] }
  0x89   :  { %2018 = vmatpush1.bf16.msra.mxu1 %v2017_v23  ;;  %v181_v44 = vld [vmem:[#allocation5 + $0x8] sm:$0xff]  ;;  %v353_v47 = vld [vmem:[#allocation8 + $0xd8] sm:$0xff]  ;;  %v2047_v48 = vpack.c.bf16 %v337_v42, %v334_v41  ;;  %v340_v51 = vld [vmem:[#allocation8 + $0x70] sm:$0xff] }
  0x8a   :  { %2006 = vmatpush3.bf16.msra.mxu0 %v2003_v14  ;;  %2020 = vmatprep.subr.bf16.mxu1 %v2019_v26  ;;  %v350_v46 = vld [vmem:[#allocation8 + $0xc0] sm:$0xff]  ;;  %v357_v49 = vld [vmem:[#allocation8 + $0xf8] sm:$0xff]  ;;  %v343_v52 = vld [vmem:[#allocation8 + $0x88] sm:$0xff] }
  0x8b   :  { %2008 = vmatprep.subr.bf16.mxu0 %v2007_v29  ;;  %v182_v53 = vld [vmem:[#allocation5 + $0x10] sm:$0xff]  ;;  %v2029_v54 = vpack.c.bf16 %v353_v47, %v350_v46  ;;  %v183_v55 = vld [vmem:[#allocation5 + $0x18] sm:$0xff]  ;;  %v346_v57 = vld [vmem:[#allocation8 + $0xa0] sm:$0xff]  ;;  %v2031_v59 = vpack.c.bf16 %v360_v50, %v357_v49  ;;  %v2051_v63 = vpack.c.bf16 %v343_v52, %v340_v51  ;;  %v376_v51 = vlaneseq }
  0x8c   :  { %v356_v56 = vld [vmem:[#allocation8 + $0xf0] sm:$0xff]  ;;  %v349_v58 = vld [vmem:[#allocation8 + $0xb8] sm:$0xff]  ;;  %v359_v60 = vld [vmem:[#allocation8 + $0x108] sm:$0xff] }
  0x8d   :  { %2022 = vmatpush1.bf16.msra.mxu1 %v2021_v34  ;;  %v184_v61 = vld [vmem:[#allocation5 + $0x20] sm:$0xff]  ;;  %v363_v62 = vld [vmem:[#allocation8 + $0x128] sm:$0xff]  ;;  %v366_v0 = vld [vmem:[#allocation8 + $0x140] sm:$0xff]  ;;  %v2033_v4 = vpack.c.bf16 %v359_v60, %v356_v56  ;;  %v2055_v11 = vpack.c.bf16 %v349_v58, %v346_v57  ;;  %v2668_v52 = vshrl.u32 %v376_v51, 7 }
  0x8e   :  { %2010 = vmatpush3.bf16.msra.mxu0 %v2007_v29  ;;  %2024 = vmatprep.subr.bf16.mxu1 %v2023_v35  ;;  %v185_v1 = vld [vmem:[#allocation5 + $0x28] sm:$0xff]  ;;  %v365_v3 = vld [vmem:[#allocation8 + $0x138] sm:$0xff]  ;;  %v372_v6 = vld [vmem:[#allocation8 + $0x170] sm:$0xff]  ;;  %v2035_v9 = vpack.c.bf16 %v366_v0, %v363_v62 }
  0x8f   :  { %2044 = vmatprep.subr.bf16.mxu0 %v2043_v38  ;;  %v362_v2 = vld [vmem:[#allocation8 + $0x120] sm:$0xff]  ;;  %v369_v5 = vld [vmem:[#allocation8 + $0x158] sm:$0xff]  ;;  %v352_v7 = vld [vmem:[#allocation8 + $0xd0] sm:$0xff]  ;;  %v386_v57 = vsub.s32 2, %v2668_v52 }
  0x90   :  { %v355_v8 = vld [vmem:[#allocation8 + $0xe8] sm:$0xff]  ;;  %v187_v12 = vld [vmem:[#allocation5 + $0x38] sm:$0xff]  ;;  %v2037_v15 = vpack.c.bf16 %v365_v3, %v362_v2  ;;  %v358_v16 = vld [vmem:[#allocation8 + $0x100] sm:$0xff]  ;;  %v2039_v18 = vpack.c.bf16 %v372_v6, %v369_v5 }
  0x91   :  { %1809 = vmatmul.mubr.msk.f32.vlgmr.msra.gmra.mrb[0].mxu0 %vm196_vm0, %v181_v44  ;;  %2026 = vmatpush1.bf16.msra.mxu1 %v2025_v43  ;;  %v186_v10 = vld [vmem:[#allocation5 + $0x30] sm:$0xff]  ;;  %v368_v13 = vld [vmem:[#allocation8 + $0x150] sm:$0xff]  ;;  %v361_v17 = vld [vmem:[#allocation8 + $0x118] sm:$0xff]  ;;  %v2059_v19 = vpack.c.bf16 %v355_v8, %v352_v7 }
  0x92   :  { %2046 = vmatpush3.bf16.msra.mxu0 %v2043_v38  ;;  %2028 = vmatprep.subr.bf16.mxu1 %v2027_v45  ;;  %v371_v14 = vld [vmem:[#allocation8 + $0x168] sm:$0xff]  ;;  %v2063_v21 = vpack.c.bf16 %v361_v17, %v358_v16  ;;  %v364_v22 = vld [vmem:[#allocation8 + $0x130] sm:$0xff]  ;;  %v370_v25 = vld [vmem:[#allocation8 + $0x160] sm:$0xff] }
  0x93   :  { %2048 = vmatprep.subr.bf16.mxu0 %v2047_v48  ;;  %1811 = vmatprep.mubr.msk.f32.mxu0 %vm196_vm0, %v182_v53  ;;  %v2041_v20 = vpack.c.bf16 %v371_v14, %v368_v13  ;;  %v367_v23 = vld [vmem:[#allocation8 + $0x148] sm:$0xff]  ;;  %v373_v26 = vld [vmem:[#allocation8 + $0x178] sm:$0xff]  ;;  %v378_v53 = vsub.s32 0, %v2668_v52 }
  0x94   :  { %v2067_v24 = vpack.c.bf16 %v367_v23, %v364_v22  ;;  %v2071_v27 = vpack.c.bf16 %v373_v26, %v370_v25  ;;  %v2626_v37 = vld [vmem:[#allocation10] ss:$8 sps:$4 sm:$0xff]   ;;  %v2628_v38 = vld [vmem:[#allocation10 + $0x4] ss:$8 sps:$4 sm:$0xff]   ;;  %v2630_v39 = vld [vmem:[#allocation10 + $0x14] ss:$8 sps:$4 sm:$0xff]  }
  0x95   :  { %2030 = vmatpush1.bf16.msra.mxu1 %v2029_v54  ;;  %1812 = vmatmul.mubr.msk.f32.gmra.mrb[2].mxu0 %vm196_vm0, %v183_v55  ;;  %v2634_v40 = vld [vmem:[#allocation10 + $0x10] ss:$8 sps:$4 sm:$0xff]   ;;  %v2637_v41 = vld [vmem:[#allocation10 + $0x24] ss:$8 sps:$4 sm:$0xff]   ;;  %v2640_v42 = vld [vmem:[#allocation10 + $0x20] ss:$8 sps:$4 sm:$0xff]  }
  0x96   :  { %2050 = vmatpush3.bf16.msra.mxu0 %v2047_v48  ;;  %2032 = vmatprep.subr.bf16.mxu1 %v2031_v59  ;;  %v2643_v43 = vld [vmem:[#allocation10 + $0x34] ss:$8 sps:$4 sm:$0xff]   ;;  %v2646_v44 = vld [vmem:[#allocation10 + $0x30] ss:$8 sps:$4 sm:$0xff]   ;;  %v2649_v45 = vld [vmem:[#allocation10 + $0x44] ss:$8 sps:$4 sm:$0xff]  }
  0x97   :  { %2052 = vmatprep.subr.bf16.mxu0 %v2051_v63  ;;  %1814 = vmatprep.mubr.msk.f32.mxu0 %vm196_vm0, %v184_v61  ;;  %v2652_v46 = vld [vmem:[#allocation10 + $0x40] ss:$8 sps:$4 sm:$0xff]   ;;  %v2655_v47 = vld [vmem:[#allocation10 + $0x54] ss:$8 sps:$4 sm:$0xff]   ;;  %v2658_v48 = vld [vmem:[#allocation10 + $0x50] ss:$8 sps:$4 sm:$0xff]  }
  0x98   :  { %v2661_v49 = vld [vmem:[#allocation10 + $0x64] ss:$8 sps:$4 sm:$0xff]   ;;  %v2664_v50 = vld [vmem:[#allocation10 + $0x60] ss:$8 sps:$4 sm:$0xff]   ;;  %v382_v54 = vsub.s32 1, %v2668_v52 }
  0x99   :  { %2034 = vmatpush1.bf16.msra.mxu1 %v2033_v4  ;;  %1815 = vmatmul.mubr.msk.f32.gmra.mrb[4].mxu0 %vm196_vm0, %v185_v1  ;;  %v374_v56 = vld [vmem:[%s2953_s4] sm:$0x7] }
  0x9a   :  { %2054 = vmatpush3.bf16.msra.mxu0 %v2051_v63  ;;  %2036 = vmatprep.subr.bf16.mxu1 %v2035_v9  ;;  %v379_v60 = vrot.slane %v374_v56, %v378_v53  ;;  %v383_v62 = vrot.slane %v374_v56, %v382_v54  ;;  %v387_v63 = vrot.slane %v374_v56, %v386_v57 }
  0x9b   :  { %2056 = vmatprep.subr.bf16.mxu0 %v2055_v11  ;;  %1817 = vmatprep.mubr.msk.f32.mxu0 %vm196_vm0, %v186_v10 }
  0x9d   :  { %2038 = vmatpush1.bf16.msra.mxu1 %v2037_v15  ;;  %1818 = vmatmul.mubr.msk.f32.gmra.mrb[6].mxu0 %vm196_vm0, %v187_v12 }
  0x9e   :  { %2058 = vmatpush3.bf16.msra.mxu0 %v2055_v11  ;;  %2040 = vmatprep.subr.bf16.mxu1 %v2039_v18 }
  0x9f   :  { %2060 = vmatprep.subr.bf16.mxu0 %v2059_v19 }
  0xa1   :  { %2042 = vmatpush1.bf16.msra.mxu1 %v2041_v20 }
  0xa2   :  { %2062 = vmatpush3.bf16.msra.mxu0 %v2059_v19  ;;  %777 = vmatprep.subr.bf16.mxu1 %v2628_v38 }
  0xa3   :  { %2064 = vmatprep.subr.bf16.mxu0 %v2063_v21 }
  0xa6   :  { %2066 = vmatpush3.bf16.msra.mxu0 %v2063_v21 }
  0xa7   :  { %2068 = vmatprep.subr.bf16.mxu0 %v2067_v24 }
  0xaa   :  { %2070 = vmatpush3.bf16.msra.mxu0 %v2067_v24 }
  0xab   :  { %2072 = vmatprep.subr.bf16.mxu0 %v2071_v27 }
  0xae   :  { %2074 = vmatpush3.bf16.msra.mxu0 %v2071_v27 }
  0xaf   :  { %1864 = vmatprep.subr.bf16.mxu0 %v2429_v28 }
 0x164   :  { %v1810_v29 = vpop.f32.mrb[0].mxu0 }
 0x165   :  { %v287_v30 = vpop.f32.mrb[1].mxu0 }
 0x166   :  { %456 = vmatmul.mubr.f32.vlgmr.msra.gmra.mrb[0].mxu1 %v287_v30  ;;  %1852 = vmatprep.mubr.f32.mxu0 %v287_v30 }
 0x167   :  { %1853 = vmatmul.mubr.f32.vlgmr.msra.gmra.mrb[8].mxu0 %v1810_v29  ;;  %459 = vmatprep.mubr.f32.mxu1 %v2429_v28 }
 0x168   :  { %v1813_v31 = vpop.f32.mrb[2].mxu0  ;;  %778 = vmatpush1.bf16.msra.mxu1 %v2626_v37 }
 0x169   :  { %v297_v32 = vpop.f32.mrb[3].mxu0  ;;  %779 = vmatprep.subr.bf16.mxu1 %v2630_v39 }
 0x16a   :  { %460 = vmatmul.mubr.f32.gmra.mrb[2].mxu1 %v1810_v29  ;;  %1855 = vmatprep.mubr.f32.mxu0 %v297_v32 }
 0x16b   :  { %465 = vmatprep.mubr.f32.mxu1 %v2429_v28  ;;  %1856 = vmatmul.mubr.f32.gmra.mrb[10].mxu0 %v1813_v31 }
 0x16c   :  { %v1816_v33 = vpop.f32.mrb[4].mxu0  ;;  %780 = vmatpush1.bf16.msra.mxu1 %v2634_v40 }
 0x16d   :  { %v307_v34 = vpop.f32.mrb[5].mxu0  ;;  %781 = vmatprep.subr.bf16.mxu1 %v2637_v41 }
 0x16e   :  { %466 = vmatmul.mubr.f32.gmra.mrb[4].mxu1 %v297_v32  ;;  %1858 = vmatprep.mubr.f32.mxu0 %v307_v34 }
 0x16f   :  { %471 = vmatprep.mubr.f32.mxu1 %v2429_v28  ;;  %1859 = vmatmul.mubr.f32.gmra.mrb[12].mxu0 %v1816_v33 }
 0x170   :  { %v1819_v35 = vpop.f32.mrb[6].mxu0  ;;  %782 = vmatpush1.bf16.msra.mxu1 %v2640_v42 }
 0x171   :  { %v317_v36 = vpop.f32.mrb[7].mxu0  ;;  %783 = vmatprep.subr.bf16.mxu1 %v2643_v43 }
 0x172   :  { %472 = vmatmul.mubr.f32.gmra.mrb[6].mxu1 %v1813_v31  ;;  %1861 = vmatprep.mubr.f32.mxu0 %v317_v36 }
 0x173   :  { %477 = vmatprep.mubr.f32.mxu1 %v2429_v28  ;;  %1862 = vmatmul.mubr.f32.gmra.mrb[14].mxu0 %v1819_v35 }
 0x174   :  { %1866 = vmatprep.mubr.msk.bf16.mxu0 %vm2430_vm1, %v2429_v28  ;;  %784 = vmatpush1.bf16.msra.mxu1 %v2646_v44 }
 0x175   :  { %785 = vmatprep.subr.bf16.mxu1 %v2649_v45 }
 0x176   :  { %478 = vmatmul.mubr.f32.gmra.mrb[8].mxu1 %v307_v34 }
 0x177   :  { %483 = vmatprep.mubr.f32.mxu1 %v2429_v28 }
 0x178   :  { %786 = vmatpush1.bf16.msra.mxu1 %v2652_v46 }
 0x179   :  { %787 = vmatprep.subr.bf16.mxu1 %v2655_v47 }
 0x17a   :  { %484 = vmatmul.mubr.f32.gmra.mrb[10].mxu1 %v1816_v33 }
 0x17b   :  { %489 = vmatprep.mubr.f32.mxu1 %v2429_v28 }
 0x17c   :  { %788 = vmatpush1.bf16.msra.mxu1 %v2658_v48 }
 0x17d   :  { %789 = vmatprep.subr.bf16.mxu1 %v2661_v49 }
 0x17e   :  { %490 = vmatmul.mubr.f32.gmra.mrb[12].mxu1 %v317_v36 }
 0x17f   :  { %495 = vmatprep.mubr.f32.mxu1 %v2429_v28 }
 0x180   :  { %790 = vmatpush1.bf16.msra.mxu1 %v2664_v50 }
 0x182   :  { %496 = vmatmul.mubr.f32.gmra.mrb[14].mxu1 %v1819_v35 }
 0x239   :  { %v457_v55 = vpop.f32.mrb[0].mxu1 }
 0x23a   :  { %v458_v58 = vpop.f32.mrb[1].mxu1  ;;  %v1854_v59 = vpop.f32.mrb[8].mxu0  ;;  %v2431_v55 = vmov 1935823168  }
 0x23b   :  { %v568_v61 = vpop.f32.mrb[9].mxu0  ;;  %v574_v54 = vadd.f32 %v1854_v59, %v387_v63  ;;  %v626_v56 = vunpack.c.l.s4 %v2431_v55  ;;  %v2740_v55 = vld [vmem:[#allocation11] sm:$0xff]  }
 0x23c   :  { %v569_v58 = vadd.f32 %v568_v61, %v387_v63 }
 0x23d   :  { %v461_v0 = vpop.f32.mrb[2].mxu1 }
 0x23e   :  { %v462_v1 = vadd.f32 %v461_v0, %v379_v60  ;;  %v463_v2 = vpop.f32.mrb[3].mxu1  ;;  %v1857_v3 = vpop.f32.mrb[10].mxu0 }
 0x23f   :  { %v464_v4 = vadd.f32 %v463_v2, %v383_v62  ;;  %v2676_v5 = vadd.f32 %v1857_v3, %v387_v63  ;;  %v578_v6 = vpop.f32.mrb[11].mxu0  ;;  %v627_v3 = vunpack.c.0.s8 %v626_v56  ;;  %v2743_v56 = vld [vmem:[#allocation11 + $0x8] sm:$0xff]  }
 0x240   :  { %v1649_v7 = vmul.f32 -1.442695, %v462_v1  ;;  %v2678_v8 = vadd.f32 %v578_v6, %v387_v63 }
 0x241   :  { %v1650_v9 = vmul.f32 -1.442695, %v464_v4  ;;  %v467_v10 = vpop.f32.mrb[4].mxu1  ;;  %v2713_v59 = vsub.s32 %v627_v3, %v2668_v52  ;;  %v2723_v52 = vld [vmem:[#allocation7] sm:$0xff]   ;;  %v2759_v3 = vld [vmem:[#allocation11 + $0x28] sm:$0xff]  }
 0x242   :  { %2158 = vpow2.f32 %v1649_v7  ;;  %v2680_v11 = vadd.f32 %v467_v10, %v379_v60  ;;  %v469_v12 = vpop.f32.mrb[5].mxu1  ;;  %v1860_v13 = vpop.f32.mrb[12].mxu0 }
 0x243   :  { %2160 = vpow2.f32 %v1650_v9  ;;  %v2682_v14 = vadd.f32 %v469_v12, %v383_v62  ;;  %v2684_v15 = vadd.f32 %v1860_v13, %v387_v63  ;;  %v588_v16 = vpop.f32.mrb[13].mxu0 }
 0x244   :  { %v2686_v17 = vadd.f32 %v588_v16, %v387_v63 }
 0x245   :  { %v473_v18 = vpop.f32.mrb[6].mxu1 }
 0x246   :  { %v2688_v19 = vadd.f32 %v473_v18, %v379_v60  ;;  %v475_v20 = vpop.f32.mrb[7].mxu1  ;;  %v1863_v21 = vpop.f32.mrb[14].mxu0 }
 0x247   :  { %v2690_v22 = vadd.f32 %v475_v20, %v383_v62  ;;  %v2692_v23 = vadd.f32 %v1863_v21, %v387_v63  ;;  %v598_v24 = vpop.f32.mrb[15].mxu0 }
 0x248   :  { %v2694_v25 = vadd.f32 %v598_v24, %v387_v63 }
 0x249   :  { %v479_v26 = vpop.f32.mrb[8].mxu1 }
 0x24a   :  { %v2696_v27 = vadd.f32 %v479_v26, %v379_v60  ;;  %v481_v29 = vpop.f32.mrb[9].mxu1 }
 0x24b   :  { %v2698_v30 = vadd.f32 %v481_v29, %v383_v62  ;;  %v2730_v29 = vld [vmem:[#allocation10 + $0x74] ss:$8 sps:$4 sm:$0xff]  }
 0x24c   :  { %v2159_v31 = vpop.eup %2158  ;;  %791 = vmatprep.subr.bf16.mxu1 %v2730_v29 }
 0x24d   :  { %v2161_v32 = vpop.eup %2160  ;;  %v613_v33 = vadd.f32 1.0, %v2159_v31  ;;  %v485_v34 = vpop.f32.mrb[10].mxu1  ;;  %v2732_v31 = vld [vmem:[#allocation10 + $0x70] ss:$8 sps:$4 sm:$0xff]  }
 0x24e   :  { %v614_v35 = vadd.f32 1.0, %v2161_v32  ;;  %v2700_v36 = vadd.f32 %v485_v34, %v379_v60  ;;  %v487_v51 = vpop.f32.mrb[11].mxu1  ;;  %792 = vmatpush1.bf16.msra.mxu1 %v2732_v31  ;;  %v2432_v32 = vmov 0  }
 0x24f   :  { %2162 = vrcp.f32 %v613_v33  ;;  %v2702_v53 = vadd.f32 %v487_v51, %v383_v62  ;;  %1876 = vmatprep.subr.bf16.mxu1 %v2429_v28  ;;  %809 = vmatprep.mubr.bf16.mxu1 %v2432_v32 }
 0x250   :  { %2164 = vrcp.f32 %v614_v35 }
 0x251   :  { %v491_v57 = vpop.f32.mrb[12].mxu1  ;;  %2166 = vtanh.f32 %v574_v54 }
 0x252   :  { %v2704_v0 = vadd.f32 %v491_v57, %v379_v60  ;;  %v493_v1 = vpop.f32.mrb[13].mxu1  ;;  %2168 = vtanh.f32 %v569_v58  ;;  %v2747_v57 = vld [vmem:[#allocation11 + $0x10] sm:$0xff]   ;;  %v2751_v58 = vld [vmem:[#allocation11 + $0x18] sm:$0xff]  }
 0x253   :  { %v2706_v2 = vadd.f32 %v493_v1, %v383_v62  ;;  %v2755_v1 = vld [vmem:[#allocation11 + $0x20] sm:$0xff]  }
 0x255   :  { %v497_v4 = vpop.f32.mrb[14].mxu1 }
 0x256   :  { %v2708_v6 = vadd.f32 %v497_v4, %v379_v60  ;;  %v499_v7 = vpop.f32.mrb[15].mxu1  ;;  %v2763_v4 = vld [vmem:[#allocation11 + $0x30] sm:$0xff]  }
 0x257   :  { %v2710_v9 = vadd.f32 %v499_v7, %v383_v62 }
 0x259   :  { %v2163_v10 = vpop.eup %2162 }
 0x25a   :  { %v2165_v12 = vpop.eup %2164 }
 0x25b   :  { %v621_v61 = vcombine.low %v2163_v10, %v2165_v12  ;;  %v622_v63 = vcombine.high %v2163_v10, %v2165_v12  ;;  %v2167_v18 = vpop.eup %2166 }
 0x25c   :  { %v2169_v24 = vpop.eup %2168 }
 0x25d   :  { %v631_v13 = vrot.slane %v621_v61, %v2713_v59  ;;  %v638_v16 = vrot.slane %v622_v63, %v2713_v59 }
 0x25f   :  { %v641_v20 = vsub.f32 1.0, %v631_v13  ;;  %v642_v21 = vsub.f32 1.0, %v638_v16 }
 0x261   :  { %v2717_v60 = vmul.f32 %v2169_v24, %v641_v20  ;;  %v2719_v26 = vmul.f32 %v2167_v18, %v642_v21 }
 0x263   :  { %v645_v62 = vpack.c.bf16 %v2719_v26, %v2717_v60 }
 0x265   :  { %1865 = vmatpush3.bf16.msra.mxu0 %v645_v62 }
 0x266   :  { %1870 = vmatprep.subr.bf16.mxu0 %v2429_v28 }
 0x268   :  { %1867 = vmatmul.mubr.msk.bf16.vlgmr.msra.gmra.mrb[16].mxu0 %vm651_vm2, %v2723_v52 }
 0x269   :  { %1872 = vmatprep.mubr.msk.bf16.mxu0 %vm2430_vm1, %v2429_v28 }
 0x33b   :  { %v689_v33 = vpop.f32.mrb[16].mxu0 }
 0x33c   :  { %v1868_v34 = vpop.f32.mrb[17].mxu0 }
 0x33d   :  { %v692_v35 = vpop.f32.mrb[18].mxu0 }
 0x33e   :  { %v696_v51 = vpack.c.bf16 %v692_v35, %v689_v33  ;;  %v1869_v54 = vpop.f32.mrb[19].mxu0 }
 0x340   :  { %810 = vmatmul.mubr.bf16.vlgmr.msra.gmra.mrb[16].mxu1 %v696_v51 }
 0x341   :  { %1892 = vmatprep.mubr.msk.bf16.mxu1 %vm2430_vm1, %v2429_v28  ;;  %1877 = vmatpush3.bf16.msra.mxu1 %v2740_v55 }
 0x342   :  { %1878 = vmatprep.subr.bf16.mxu1 %v2429_v28 }
 0x345   :  { %1879 = vmatpush3.bf16.msra.mxu1 %v2743_v56 }
 0x346   :  { %1880 = vmatprep.subr.bf16.mxu1 %v2429_v28 }
 0x349   :  { %1881 = vmatpush3.bf16.msra.mxu1 %v2747_v57 }
 0x34a   :  { %1882 = vmatprep.subr.bf16.mxu1 %v2429_v28 }
 0x34d   :  { %1883 = vmatpush3.bf16.msra.mxu1 %v2751_v58 }
 0x34e   :  { %1884 = vmatprep.subr.bf16.mxu1 %v2429_v28 }
 0x351   :  { %1885 = vmatpush3.bf16.msra.mxu1 %v2755_v1 }
 0x352   :  { %1886 = vmatprep.subr.bf16.mxu1 %v2429_v28 }
 0x355   :  { %1887 = vmatpush3.bf16.msra.mxu1 %v2759_v3 }
 0x356   :  { %1888 = vmatprep.subr.bf16.mxu1 %v2429_v28 }
 0x359   :  { %1889 = vmatpush3.bf16.msra.mxu1 %v2763_v4 }
 0x35a   :  { %1890 = vmatprep.subr.bf16.mxu1 %v2429_v28 }
 0x413   :  { %v811_v7 = vpop.f32.mrb[16].mxu1 }
 0x414   :  { %v820_v10 = vadd.f32 %v811_v7, %v2680_v11  ;;  %v813_v12 = vpop.f32.mrb[17].mxu1 }
 0x415   :  { %v821_v61 = vadd.f32 %v813_v12, %v2682_v14  ;;  %v815_v63 = vpop.f32.mrb[18].mxu1 }
 0x416   :  { %v1669_v13 = vmul.f32 -1.442695, %v820_v10  ;;  %v822_v16 = vadd.f32 %v815_v63, %v2688_v19  ;;  %v817_v18 = vpop.f32.mrb[19].mxu1 }
 0x417   :  { %v1670_v20 = vmul.f32 -1.442695, %v821_v61  ;;  %v823_v21 = vadd.f32 %v817_v18, %v2690_v22 }
 0x418   :  { %2170 = vpow2.f32 %v1669_v13  ;;  %v1671_v24 = vmul.f32 -1.442695, %v822_v16 }
 0x419   :  { %2172 = vpow2.f32 %v1670_v20  ;;  %v1672_v62 = vmul.f32 -1.442695, %v823_v21 }
 0x41a   :  { %2174 = vpow2.f32 %v1671_v24 }
 0x41b   :  { %2176 = vpow2.f32 %v1672_v62 }
 0x422   :  { %v2171_v33 = vpop.eup %2170 }
 0x423   :  { %v2173_v34 = vpop.eup %2172  ;;  %v836_v11 = vadd.f32 1.0, %v2171_v33  ;;  %v2781_v33 = vld [vmem:[#allocation11 + $0x38] sm:$0xff]  }
 0x424   :  { %v2175_v35 = vpop.eup %2174  ;;  %v837_v51 = vadd.f32 1.0, %v2173_v34  ;;  %1891 = vmatpush3.bf16.msra.mxu1 %v2781_v33 }
 0x425   :  { %v2177_v14 = vpop.eup %2176  ;;  %2178 = vrcp.f32 %v836_v11  ;;  %v838_v54 = vadd.f32 1.0, %v2175_v35  ;;  %1902 = vmatprep.subr.bf16.mxu1 %v2429_v28 }
 0x426   :  { %2180 = vrcp.f32 %v837_v51  ;;  %v839_v19 = vadd.f32 1.0, %v2177_v14 }
 0x427   :  { %2182 = vrcp.f32 %v838_v54 }
 0x428   :  { %2184 = vrcp.f32 %v839_v19 }
 0x42f   :  { %v2179_v7 = vpop.eup %2178 }
 0x430   :  { %v2181_v22 = vpop.eup %2180 }
 0x431   :  { %v2183_v10 = vpop.eup %2182  ;;  %v850_v12 = vcombine.low %v2179_v7, %v2181_v22  ;;  %v851_v61 = vcombine.high %v2179_v7, %v2181_v22 }
 0x432   :  { %v2185_v63 = vpop.eup %2184 }
 0x433   :  { %v870_v13 = vcombine.low %v2183_v10, %v2185_v63  ;;  %v871_v16 = vcombine.high %v2183_v10, %v2185_v63  ;;  %v860_v18 = vrot.slane %v850_v12, %v2713_v59  ;;  %v867_v20 = vrot.slane %v851_v61, %v2713_v59 }
 0x435   :  { %v888_v21 = vmul.f32 %v860_v18, %v2717_v60  ;;  %v889_v24 = vmul.f32 %v867_v20, %v2719_v26  ;;  %v880_v61 = vrot.slane %v870_v13, %v2713_v59  ;;  %v887_v63 = vrot.slane %v871_v16, %v2713_v59 }
 0x437   :  { %v890_v62 = vpack.c.bf16 %v889_v24, %v888_v21  ;;  %v1028_v18 = vsub.f32 1.0, %v880_v61  ;;  %v1029_v24 = vsub.f32 1.0, %v887_v63 }
 0x439   :  { %1871 = vmatpush3.bf16.msra.mxu0 %v890_v62  ;;  %v1026_v62 = vmul.f32 %v880_v61, %v2717_v60 }
 0x43a   :  { %1896 = vmatprep.subr.bf16.mxu0 %v2429_v28 }
 0x43c   :  { %1873 = vmatmul.mubr.msk.bf16.vlgmr.msra.gmra.mrb[20].mxu0 %vm651_vm2, %v2723_v52 }
 0x43d   :  { %1898 = vmatprep.mubr.msk.bf16.mxu0 %vm2430_vm1, %v2429_v28 }
 0x50f   :  { %v925_v34 = vpop.f32.mrb[20].mxu0 }
 0x510   :  { %v1874_v11 = vpop.f32.mrb[21].mxu0 }
 0x511   :  { %v928_v35 = vpop.f32.mrb[22].mxu0 }
 0x512   :  { %v932_v51 = vpack.c.bf16 %v928_v35, %v925_v34  ;;  %v1875_v14 = vpop.f32.mrb[23].mxu0 }
 0x514   :  { %1893 = vmatmul.mubr.bf16.vlgmr.msra.gmra.mrb[20].mxu1 %v932_v51 }
 0x515   :  { %1904 = vmatprep.mubr.msk.bf16.mxu1 %vm2430_vm1, %v2429_v28 }
 0x5e7   :  { %v1015_v54 = vpop.f32.mrb[20].mxu1 }
 0x5e8   :  { %v1022_v19 = vadd.f32 %v1015_v54, %v2678_v8  ;;  %v1894_v7 = vpop.f32.mrb[21].mxu1  ;;  %v1027_v8 = vmul.f32 %v887_v63, %v2719_v26 }
 0x5e9   :  { %v1018_v22 = vpop.f32.mrb[22].mxu1 }
 0x5ea   :  { %2186 = vtanh.f32 %v1022_v19  ;;  %v1023_v10 = vadd.f32 %v1018_v22, %v2676_v5  ;;  %v1895_v12 = vpop.f32.mrb[23].mxu1 }
 0x5ec   :  { %2188 = vtanh.f32 %v1023_v10 }
 0x5f4   :  { %v2187_v20 = vpop.eup %2186 }
 0x5f5   :  { %v1030_v21 = vmul.f32 %v2187_v20, %v1028_v18 }
 0x5f6   :  { %v2189_v34 = vpop.eup %2188 }
 0x5f7   :  { %v1031_v11 = vmul.f32 %v2189_v34, %v1029_v24  ;;  %v2793_v35 = vadd.f32 %v1030_v21, %v1026_v62 }
 0x5f9   :  { %v2795_v51 = vadd.f32 %v1031_v11, %v1027_v8 }
 0x5fb   :  { %v1034_v5 = vpack.c.bf16 %v2795_v51, %v2793_v35 }
 0x5fd   :  { %1897 = vmatpush3.bf16.msra.mxu0 %v1034_v5 }
 0x5fe   :  { %1077 = vmatprep.subr.bf16.mxu0 %v2628_v38 }
 0x600   :  { %1899 = vmatmul.mubr.msk.bf16.vlgmr.msra.gmra.mrb[24].mxu0 %vm651_vm2, %v2723_v52 }
 0x601   :  { %1078 = vmatpush1.bf16.msra.mxu0 %v2626_v37  ;;  %1109 = vmatprep.mubr.bf16.mxu0 %v2432_v32 }
 0x602   :  { %1079 = vmatprep.subr.bf16.mxu0 %v2630_v39 }
 0x605   :  { %1080 = vmatpush1.bf16.msra.mxu0 %v2634_v40 }
 0x606   :  { %1081 = vmatprep.subr.bf16.mxu0 %v2637_v41 }
 0x609   :  { %1082 = vmatpush1.bf16.msra.mxu0 %v2640_v42 }
 0x60a   :  { %1083 = vmatprep.subr.bf16.mxu0 %v2643_v43 }
 0x60d   :  { %1084 = vmatpush1.bf16.msra.mxu0 %v2646_v44 }
 0x60e   :  { %1085 = vmatprep.subr.bf16.mxu0 %v2649_v45 }
 0x611   :  { %1086 = vmatpush1.bf16.msra.mxu0 %v2652_v46 }
 0x612   :  { %1087 = vmatprep.subr.bf16.mxu0 %v2655_v47 }
 0x615   :  { %1088 = vmatpush1.bf16.msra.mxu0 %v2658_v48 }
 0x616   :  { %1089 = vmatprep.subr.bf16.mxu0 %v2661_v49 }
 0x619   :  { %1090 = vmatpush1.bf16.msra.mxu0 %v2664_v50 }
 0x61a   :  { %1091 = vmatprep.subr.bf16.mxu0 %v2730_v29 }
 0x61d   :  { %1092 = vmatpush1.bf16.msra.mxu0 %v2732_v31 }
 0x61e   :  { %1928 = vmatprep.subr.bf16.mxu0 %v2429_v28 }
 0x6d3   :  { %v1069_v60 = vpop.f32.mrb[24].mxu0 }
 0x6d4   :  { %v1900_v26 = vpop.f32.mrb[25].mxu0 }
 0x6d5   :  { %v1072_v13 = vpop.f32.mrb[26].mxu0 }
 0x6d6   :  { %v1076_v16 = vpack.c.bf16 %v1072_v13, %v1069_v60  ;;  %v1901_v14 = vpop.f32.mrb[27].mxu0 }
 0x6d8   :  { %1110 = vmatmul.mubr.bf16.vlgmr.msra.gmra.mrb[28].mxu0 %v1076_v16 }
 0x6d9   :  { %1930 = vmatprep.mubr.msk.bf16.mxu0 %vm2430_vm1, %v2429_v28 }
 0x7ab   :  { %v1111_v54 = vpop.f32.mrb[28].mxu0 }
 0x7ac   :  { %v1120_v19 = vadd.f32 %v1111_v54, %v2696_v27  ;;  %v1113_v7 = vpop.f32.mrb[29].mxu0 }
 0x7ad   :  { %v1121_v22 = vadd.f32 %v1113_v7, %v2698_v30  ;;  %v1115_v10 = vpop.f32.mrb[30].mxu0 }
 0x7ae   :  { %v1683_v12 = vmul.f32 -1.442695, %v1120_v19  ;;  %v1122_v61 = vadd.f32 %v1115_v10, %v2700_v36  ;;  %v1117_v63 = vpop.f32.mrb[31].mxu0 }
 0x7af   :  { %v1684_v18 = vmul.f32 -1.442695, %v1121_v22  ;;  %v1123_v20 = vadd.f32 %v1117_v63, %v2702_v53 }
 0x7b0   :  { %2190 = vpow2.f32 %v1683_v12  ;;  %v1685_v21 = vmul.f32 -1.442695, %v1122_v61 }
 0x7b1   :  { %2192 = vpow2.f32 %v1684_v18  ;;  %v1686_v24 = vmul.f32 -1.442695, %v1123_v20 }
 0x7b2   :  { %2194 = vpow2.f32 %v1685_v21 }
 0x7b3   :  { %2196 = vpow2.f32 %v1686_v24 }
 0x7ba   :  { %v2191_v62 = vpop.eup %2190 }
 0x7bb   :  { %v2193_v34 = vpop.eup %2192  ;;  %v1136_v27 = vadd.f32 1.0, %v2191_v62 }
 0x7bc   :  { %v2195_v11 = vpop.eup %2194  ;;  %v1137_v8 = vadd.f32 1.0, %v2193_v34 }
 0x7bd   :  { %v2197_v30 = vpop.eup %2196  ;;  %2198 = vrcp.f32 %v1136_v27  ;;  %v1138_v5 = vadd.f32 1.0, %v2195_v11 }
 0x7be   :  { %2200 = vrcp.f32 %v1137_v8  ;;  %v1139_v36 = vadd.f32 1.0, %v2197_v30 }
 0x7bf   :  { %2202 = vrcp.f32 %v1138_v5 }
 0x7c0   :  { %2204 = vrcp.f32 %v1139_v36 }
 0x7c7   :  { %v2199_v60 = vpop.eup %2198 }
 0x7c8   :  { %v2201_v53 = vpop.eup %2200 }
 0x7c9   :  { %v2203_v26 = vpop.eup %2202  ;;  %v1150_v13 = vcombine.low %v2199_v60, %v2201_v53  ;;  %v1151_v16 = vcombine.high %v2199_v60, %v2201_v53 }
 0x7ca   :  { %v2205_v14 = vpop.eup %2204 }
 0x7cb   :  { %v1170_v54 = vcombine.low %v2203_v26, %v2205_v14  ;;  %v1171_v19 = vcombine.high %v2203_v26, %v2205_v14  ;;  %v1160_v7 = vrot.slane %v1150_v13, %v2713_v59  ;;  %v1167_v22 = vrot.slane %v1151_v16, %v2713_v59 }
 0x7cd   :  { %v1188_v10 = vmul.f32 %v1160_v7, %v2793_v35  ;;  %v1189_v12 = vmul.f32 %v1167_v22, %v2795_v51  ;;  %v1180_v5 = vrot.slane %v1170_v54, %v2713_v59  ;;  %v1187_v36 = vrot.slane %v1171_v19, %v2713_v59 }
 0x7cf   :  { %v1190_v61 = vpack.c.bf16 %v1189_v12, %v1188_v10  ;;  %v1280_v60 = vsub.f32 1.0, %v1180_v5  ;;  %v1281_v13 = vsub.f32 1.0, %v1187_v36  ;;  %v1278_v16 = vmul.f32 %v1180_v5, %v2793_v35 }
 0x7d1   :  { %1903 = vmatpush3.bf16.msra.mxu1 %v1190_v61 }
 0x7d2   :  { %1908 = vmatprep.subr.bf16.mxu1 %v2429_v28 }
 0x7d4   :  { %1905 = vmatmul.mubr.msk.bf16.vlgmr.msra.gmra.mrb[24].mxu1 %vm651_vm2, %v2723_v52 }
 0x7d5   :  { %1909 = vmatpush3.bf16.msra.mxu1 %v2740_v55  ;;  %1924 = vmatprep.mubr.msk.bf16.mxu1 %vm2430_vm1, %v2429_v28 }
 0x7d6   :  { %1910 = vmatprep.subr.bf16.mxu1 %v2429_v28 }
 0x7d9   :  { %1911 = vmatpush3.bf16.msra.mxu1 %v2743_v56 }
 0x7da   :  { %1912 = vmatprep.subr.bf16.mxu1 %v2429_v28 }
 0x7dd   :  { %1913 = vmatpush3.bf16.msra.mxu1 %v2747_v57 }
 0x7de   :  { %1914 = vmatprep.subr.bf16.mxu1 %v2429_v28 }
 0x7e1   :  { %1915 = vmatpush3.bf16.msra.mxu1 %v2751_v58 }
 0x7e2   :  { %1916 = vmatprep.subr.bf16.mxu1 %v2429_v28 }
 0x7e5   :  { %1917 = vmatpush3.bf16.msra.mxu1 %v2755_v1 }
 0x7e6   :  { %1918 = vmatprep.subr.bf16.mxu1 %v2429_v28 }
 0x7e9   :  { %1919 = vmatpush3.bf16.msra.mxu1 %v2759_v3 }
 0x7ea   :  { %1920 = vmatprep.subr.bf16.mxu1 %v2429_v28 }
 0x7ed   :  { %1921 = vmatpush3.bf16.msra.mxu1 %v2763_v4 }
 0x7ee   :  { %1922 = vmatprep.subr.bf16.mxu1 %v2429_v28 }
 0x7f1   :  { %1923 = vmatpush3.bf16.msra.mxu1 %v2781_v33 }
 0x7f2   :  { %1934 = vmatprep.subr.bf16.mxu1 %v2429_v28 }
 0x8a7   :  { %v1225_v63 = vpop.f32.mrb[24].mxu1 }
 0x8a8   :  { %v1906_v18 = vpop.f32.mrb[25].mxu1 }
 0x8a9   :  { %v1228_v20 = vpop.f32.mrb[26].mxu1 }
 0x8aa   :  { %v1232_v21 = vpack.c.bf16 %v1228_v20, %v1225_v63  ;;  %v1907_v24 = vpop.f32.mrb[27].mxu1 }
 0x8ac   :  { %1925 = vmatmul.mubr.bf16.vlgmr.msra.gmra.mrb[28].mxu1 %v1232_v21 }
 0x8ad   :  { %1936 = vmatprep.mubr.msk.bf16.mxu1 %vm2430_vm1, %v2429_v28 }
 0x97f   :  { %v1267_v62 = vpop.f32.mrb[28].mxu1 }
 0x980   :  { %v1274_v34 = vadd.f32 %v1267_v62, %v2686_v17  ;;  %v1926_v27 = vpop.f32.mrb[29].mxu1  ;;  %v1279_v17 = vmul.f32 %v1187_v36, %v2795_v51  ;;  %v167_v36 = vld [vmem:[#allocation13 + $0x20] sm:$0xff] }
 0x981   :  { %v1270_v11 = vpop.f32.mrb[30].mxu1 }
 0x982   :  { %2206 = vtanh.f32 %v1274_v34  ;;  %v1275_v8 = vadd.f32 %v1270_v11, %v2684_v15  ;;  %v1927_v30 = vpop.f32.mrb[31].mxu1 }
 0x984   :  { %2208 = vtanh.f32 %v1275_v8 }
 0x98c   :  { %v2207_v53 = vpop.eup %2206 }
 0x98d   :  { %v1282_v26 = vmul.f32 %v2207_v53, %v1280_v60 }
 0x98e   :  { %v2209_v14 = vpop.eup %2208 }
 0x98f   :  { %v1283_v7 = vmul.f32 %v2209_v14, %v1281_v13  ;;  %v2858_v22 = vadd.f32 %v1282_v26, %v1278_v16  ;;  %v169_v26 = vld [vmem:[#allocation13 + $0x30] sm:$0xff]  ;;  %v170_v13 = vld [vmem:[#allocation13 + $0x38] sm:$0xff]  ;;  %v171_v14 = vld [vmem:[#allocation13 + $0x40] sm:$0xff] }
 0x990   :  { %v2087_v16 = vpack.c.bf16 %v170_v13, %v169_v26 }
 0x991   :  { %v2860_v10 = vadd.f32 %v1283_v7, %v1279_v17  ;;  %v172_v7 = vld [vmem:[#allocation13 + $0x48] sm:$0xff] }
 0x992   :  { %v2091_v17 = vpack.c.bf16 %v172_v7, %v171_v14 }
 0x993   :  { %v1286_v15 = vpack.c.bf16 %v2860_v10, %v2858_v22 }
 0x995   :  { %1929 = vmatpush3.bf16.msra.mxu0 %v1286_v15  ;;  %v173_v15 = vld [vmem:[#allocation13 + $0x50] sm:$0xff] }
 0x996   :  { %1329 = vmatprep.subr.bf16.mxu0 %v2628_v38 }
 0x998   :  { %1931 = vmatmul.mubr.msk.bf16.vlgmr.msra.gmra.mrb[32].mxu0 %vm651_vm2, %v2723_v52 }
 0x999   :  { %1330 = vmatpush1.bf16.msra.mxu0 %v2626_v37  ;;  %1361 = vmatprep.mubr.bf16.mxu0 %v2432_v32 }
 0x99a   :  { %1331 = vmatprep.subr.bf16.mxu0 %v2630_v39 }
 0x99d   :  { %1332 = vmatpush1.bf16.msra.mxu0 %v2634_v40 }
 0x99e   :  { %1333 = vmatprep.subr.bf16.mxu0 %v2637_v41 }
 0x9a1   :  { %1334 = vmatpush1.bf16.msra.mxu0 %v2640_v42 }
 0x9a2   :  { %1335 = vmatprep.subr.bf16.mxu0 %v2643_v43 }
 0x9a5   :  { %1336 = vmatpush1.bf16.msra.mxu0 %v2646_v44 }
 0x9a6   :  { %1337 = vmatprep.subr.bf16.mxu0 %v2649_v45 }
 0x9a9   :  { %1338 = vmatpush1.bf16.msra.mxu0 %v2652_v46 }
 0x9aa   :  { %1339 = vmatprep.subr.bf16.mxu0 %v2655_v47 }
 0x9ad   :  { %1340 = vmatpush1.bf16.msra.mxu0 %v2658_v48 }
 0x9ae   :  { %1341 = vmatprep.subr.bf16.mxu0 %v2661_v49 }
 0x9b1   :  { %1342 = vmatpush1.bf16.msra.mxu0 %v2664_v50 }
 0x9b2   :  { %1343 = vmatprep.subr.bf16.mxu0 %v2730_v29 }
 0x9b5   :  { %1344 = vmatpush1.bf16.msra.mxu0 %v2732_v31 }
 0xa6b   :  { %v1321_v37 = vpop.f32.mrb[32].mxu0 }
 0xa6c   :  { %v1932_v38 = vpop.f32.mrb[33].mxu0 }
 0xa6d   :  { %v1324_v39 = vpop.f32.mrb[34].mxu0  ;;  %v175_v38 = vld [vmem:[#allocation13 + $0x60] sm:$0xff] }
 0xa6e   :  { %v1328_v40 = vpack.c.bf16 %v1324_v39, %v1321_v37  ;;  %v1933_v41 = vpop.f32.mrb[35].mxu0  ;;  %v174_v37 = vld [vmem:[#allocation13 + $0x58] sm:$0xff] }
 0xa6f   :  { %v2095_v39 = vpack.c.bf16 %v174_v37, %v173_v15 }
 0xa70   :  { %1362 = vmatmul.mubr.bf16.vlgmr.msra.gmra.mrb[36].mxu0 %v1328_v40  ;;  %v176_v40 = vld [vmem:[#allocation13 + $0x68] sm:$0xff] }
 0xa71   :  { %v2099_v41 = vpack.c.bf16 %v176_v40, %v175_v38 }
 0xb43   :  { %v1363_v42 = vpop.f32.mrb[36].mxu0 }
 0xb44   :  { %v1372_v43 = vadd.f32 %v1363_v42, %v2704_v0  ;;  %v1365_v44 = vpop.f32.mrb[37].mxu0  ;;  %v177_v42 = vld [vmem:[#allocation13 + $0x70] sm:$0xff] }
 0xb45   :  { %v1373_v45 = vadd.f32 %v1365_v44, %v2706_v2  ;;  %v1367_v46 = vpop.f32.mrb[38].mxu0 }
 0xb46   :  { %v1689_v47 = vmul.f32 -1.442695, %v1372_v43  ;;  %v1374_v48 = vadd.f32 %v1367_v46, %v2708_v6  ;;  %v1369_v49 = vpop.f32.mrb[39].mxu0  ;;  %v178_v43 = vld [vmem:[#allocation13 + $0x78] sm:$0xff] }
 0xb47   :  { %v1690_v50 = vmul.f32 -1.442695, %v1373_v45  ;;  %v1375_v29 = vadd.f32 %v1369_v49, %v2710_v9  ;;  %v2103_v44 = vpack.c.bf16 %v178_v43, %v177_v42 }
 0xb48   :  { %2210 = vpow2.f32 %v1689_v47  ;;  %v1691_v31 = vmul.f32 -1.442695, %v1374_v48 }
 0xb49   :  { %2212 = vpow2.f32 %v1690_v50  ;;  %v1692_v32 = vmul.f32 -1.442695, %v1375_v29 }
 0xb4a   :  { %2214 = vpow2.f32 %v1691_v31 }
 0xb4b   :  { %2216 = vpow2.f32 %v1692_v32 }
 0xb52   :  { %v2211_v35 = vpop.eup %2210 }
 0xb53   :  { %v2213_v51 = vpop.eup %2212  ;;  %v1388_v0 = vadd.f32 1.0, %v2211_v35 }
 0xb54   :  { %v2215_v54 = vpop.eup %2214  ;;  %v1389_v19 = vadd.f32 1.0, %v2213_v51 }
 0xb55   :  { %v2217_v2 = vpop.eup %2216  ;;  %2218 = vrcp.f32 %v1388_v0  ;;  %v1390_v12 = vadd.f32 1.0, %v2215_v54 }
 0xb56   :  { %2220 = vrcp.f32 %v1389_v19  ;;  %v1391_v6 = vadd.f32 1.0, %v2217_v2 }
 0xb57   :  { %2222 = vrcp.f32 %v1390_v12 }
 0xb58   :  { %2224 = vrcp.f32 %v1391_v6  ;;  %v1694_v6 = vld [vmem:[%s2957_s8] ss:$0 sm:$0xff] }
 0xb5f   :  { %v2219_v61 = vpop.eup %2218 }
 0xb60   :  { %v2221_v9 = vpop.eup %2220 }
 0xb61   :  { %v2887_v63 = vpop.eup %2222  ;;  %v1402_v18 = vcombine.low %v2219_v61, %v2221_v9  ;;  %v1403_v20 = vcombine.high %v2219_v61, %v2221_v9 }
 0xb62   :  { %v2889_v21 = vpop.eup %2224 }
 0xb63   :  { %v1412_v24 = vrot.slane %v1402_v18, %v2713_v59  ;;  %v1419_v62 = vrot.slane %v1403_v20, %v2713_v59  ;;  %v1422_v34 = vcombine.low %v2887_v63, %v2889_v21  ;;  %v1423_v27 = vcombine.high %v2887_v63, %v2889_v21 }
 0xb65   :  { %v1440_v11 = vmul.f32 %v1412_v24, %v2858_v22  ;;  %v1441_v8 = vmul.f32 %v1419_v62, %v2860_v10  ;;  %v1432_v29 = vrot.slane %v1422_v34, %v2713_v59  ;;  %v1439_v31 = vrot.slane %v1423_v27, %v2713_v59 }
 0xb67   :  { %v1442_v30 = vpack.c.bf16 %v1441_v8, %v1440_v11  ;;  %v1532_v32 = vsub.f32 1.0, %v1432_v29  ;;  %v1533_v0 = vsub.f32 1.0, %v1439_v31  ;;  %v1531_v19 = vmul.f32 %v1439_v31, %v2860_v10 }
 0xb69   :  { %1935 = vmatpush3.bf16.msra.mxu1 %v1442_v30 }
 0xb6a   :  { %1940 = vmatprep.subr.bf16.mxu1 %v2429_v28 }
 0xb6c   :  { %1937 = vmatmul.mubr.msk.bf16.vlgmr.msra.gmra.mrb[32].mxu1 %vm651_vm2, %v2723_v52  ;;  %v163_v52 = vld [vmem:[#allocation13] sm:$0xff] }
 0xb6d   :  { %1941 = vmatpush3.bf16.msra.mxu1 %v2740_v55  ;;  %1956 = vmatprep.mubr.msk.bf16.mxu1 %vm2430_vm1, %v2429_v28  ;;  %v164_v55 = vld [vmem:[#allocation13 + $0x8] sm:$0xff] }
 0xb6e   :  { %1942 = vmatprep.subr.bf16.mxu1 %v2429_v28 }
 0xb71   :  { %1943 = vmatpush3.bf16.msra.mxu1 %v2743_v56  ;;  %v165_v56 = vld [vmem:[#allocation13 + $0x10] sm:$0xff] }
 0xb72   :  { %1944 = vmatprep.subr.bf16.mxu1 %v2429_v28 }
 0xb75   :  { %1945 = vmatpush3.bf16.msra.mxu1 %v2747_v57  ;;  %v2075_v57 = vpack.c.bf16 %v164_v55, %v163_v52 }
 0xb76   :  { %1946 = vmatprep.subr.bf16.mxu1 %v2429_v28 }
 0xb77   :  { %2076 = vmatprep.subr.bf16.mxu0 %v2075_v57 }
 0xb78   :  { %2078 = vmatpush3.bf16.msra.mxu0 %v2075_v57 }
 0xb79   :  { %1947 = vmatpush3.bf16.msra.mxu1 %v2751_v58  ;;  %v166_v58 = vld [vmem:[#allocation13 + $0x18] sm:$0xff] }
 0xb7a   :  { %1948 = vmatprep.subr.bf16.mxu1 %v2429_v28  ;;  %v2079_v5 = vpack.c.bf16 %v166_v58, %v165_v56 }
 0xb7c   :  { %2080 = vmatprep.subr.bf16.mxu0 %v2079_v5 }
 0xb7d   :  { %1949 = vmatpush3.bf16.msra.mxu1 %v2755_v1  ;;  %v168_v1 = vld [vmem:[#allocation13 + $0x28] sm:$0xff]  ;;  %2082 = vmatpush3.bf16.msra.mxu0 %v2079_v5 }
 0xb7e   :  { %1950 = vmatprep.subr.bf16.mxu1 %v2429_v28 }
 0xb81   :  { %1951 = vmatpush3.bf16.msra.mxu1 %v2759_v3  ;;  %v2083_v3 = vpack.c.bf16 %v168_v1, %v167_v36 }
 0xb82   :  { %1952 = vmatprep.subr.bf16.mxu1 %v2429_v28 }
 0xb83   :  { %2084 = vmatprep.subr.bf16.mxu0 %v2083_v3 }
 0xb84   :  { %2086 = vmatpush3.bf16.msra.mxu0 %v2083_v3 }
 0xb85   :  { %1953 = vmatpush3.bf16.msra.mxu1 %v2763_v4  ;;  %2088 = vmatprep.subr.bf16.mxu0 %v2087_v16 }
 0xb86   :  { %1954 = vmatprep.subr.bf16.mxu1 %v2429_v28 }
 0xb88   :  { %2090 = vmatpush3.bf16.msra.mxu0 %v2087_v16 }
 0xb89   :  { %1955 = vmatpush3.bf16.msra.mxu1 %v2781_v33  ;;  %2092 = vmatprep.subr.bf16.mxu0 %v2091_v17 }
 0xb8c   :  { %2094 = vmatpush3.bf16.msra.mxu0 %v2091_v17 }
 0xb8d   :  { %2096 = vmatprep.subr.bf16.mxu0 %v2095_v39 }
 0xb90   :  { %2098 = vmatpush3.bf16.msra.mxu0 %v2095_v39 }
 0xb91   :  { %2100 = vmatprep.subr.bf16.mxu0 %v2099_v41 }
 0xb94   :  { %2102 = vmatpush3.bf16.msra.mxu0 %v2099_v41 }
 0xb95   :  { %2104 = vmatprep.subr.bf16.mxu0 %v2103_v44 }
 0xb98   :  { %2106 = vmatpush3.bf16.msra.mxu0 %v2103_v44 }
 0xc3f   :  { %v1477_v4 = vpop.f32.mrb[32].mxu1 }
 0xc40   :  { %v1938_v60 = vpop.f32.mrb[33].mxu1 }
 0xc41   :  { %v1480_v28 = vpop.f32.mrb[34].mxu1 }
 0xc42   :  { %v1484_v53 = vpack.c.bf16 %v1480_v28, %v1477_v4  ;;  %v1939_v33 = vpop.f32.mrb[35].mxu1 }
 0xc44   :  { %1957 = vmatmul.mubr.bf16.vlgmr.msra.gmra.mrb[36].mxu1 %v1484_v53 }
 0xd17   :  { %v1519_v45 = vpop.f32.mrb[36].mxu1 }
 0xd18   :  { %v1526_v46 = vadd.f32 %v1519_v45, %v2694_v25  ;;  %v1958_v47 = vpop.f32.mrb[37].mxu1  ;;  %v1530_v25 = vmul.f32 %v1432_v29, %v2858_v22 }
 0xd19   :  { %v1522_v48 = vpop.f32.mrb[38].mxu1 }
 0xd1a   :  { %2226 = vtanh.f32 %v1526_v46  ;;  %v1527_v49 = vadd.f32 %v1522_v48, %v2692_v23  ;;  %v1959_v50 = vpop.f32.mrb[39].mxu1 }
 0xd1c   :  { %2228 = vtanh.f32 %v1527_v49 }
 0xd24   :  { %v2227_v35 = vpop.eup %2226 }
 0xd25   :  { %v1534_v51 = vmul.f32 %v2227_v35, %v1532_v32 }
 0xd26   :  { %v2229_v54 = vpop.eup %2228 }
 0xd27   :  { %v1536_v23 = vadd.f32 %v1534_v51, %v1530_v25  ;;  %v1535_v2 = vmul.f32 %v2229_v54, %v1533_v0 }
 0xd29   :  { %1992 = vmatprep.mubr.f32.mxu0 %v1536_v23  ;;  %v1537_v12 = vadd.f32 %v1535_v2, %v1531_v19 }
 0xd2b   :  { %1993 = vmatmul.mubr.f32.vlgmr.msra.gmra.mrb[40].mxu0 %v1537_v12 }
 0xdfe   :  { %v1994_v59 = vpop.f32.mrb[40].mxu0 }
 0xdff   :  { %v1616_v61 = vadd.f32 %v1994_v59, %v1694_v6  ;;  %v1610_v9 = vpop.f32.mrb[41].mxu0 }
 0xe00   :  { %v1611_v22 = vadd.f32 %v1694_v6, %v1610_v9 }
 0xe01   :  { %1620 = vst [vmem:[#allocation14 + $0x8] sm:$0xff] %v1616_v61 }
 0xe02   :  { %1619 = vst [vmem:[#allocation14] sm:$0xff] %v1611_v22 }
 0xe03   :  { %2395 = shalt.err (!%p2392_p4)
}
 0xe04   :  { %s2396_s8 = scalar_lea.hbm %s2958_s9, 256 }
 0xe05   :  { %p2397_p5 = scmp.ne.s32.totalorder %s2958_s9, %s2396_s8  ;;  %p2400_p6 = scmp.lt.u32.totalorder %s2396_s8, %s2958_s9 }
 0xe07   :  { %p2402_p7 = pnand %p2400_p6, %p2397_p5 }
 0xe09   :  { %2405 = shalt.err (!%p2402_p7)
}
 0xe0a   :  { %1632 = dma.vmem_to_hbm [thread:$0]  %s1627_s14, 256, %s2958_s9, [#allocation4], %s2418_s21, %s2418_s21, %s2419_s22  }
 0xe0b   :  { %2414 = dma.done.wait [#allocation4], 256  }
 0xe0c   :  { %2415 = vsyncadd [#allocation4], 4294967040 }
 0xe0d   :  { %1636 = vsyncpa [#allocation3], 1 }
 0xe0e   :  { %1637 = vsyncpa [#allocation6], 1 }
 0xe0f   :  { %1638 = vsyncpa [#allocation9], 1 }
 0xe10   :  { %1639 = vsyncpa [#allocation12], 1 }
 0xe11   :  { %1640 = vsyncpa [#allocation4], 1 }

</bundles_post_ra>
